<compile_context>
chip_gen: v6e
topology: v6e:2x2x1
jax: 0.10.0
libtpu: 0.0.40
codegen_flags: <defaults>
</compile_context>

<pallas_src>
import functools

import jax
import jax.numpy as jnp
import numpy as np
from jax.experimental import pallas as pl
from jax.experimental.pallas import tpu as pltpu

EPS = 1e-5
CP = 128   # every channel dimension is zero-padded to one full lane width


def _full_spec(shape):
    # whole-array block (everything fits in VMEM at these shapes)
    return pl.BlockSpec(shape, lambda i: (0,) * len(shape))


def _bn_scale_shift(y, g, b, inv_m):
    """One-pass training-mode BatchNorm stats -> fused per-channel scale/shift (f32)."""
    s1 = jnp.sum(y, axis=0, keepdims=True)
    s2 = jnp.sum(y * y, axis=0, keepdims=True)
    mean = s1 * inv_m
    var = jnp.maximum(s2 * inv_m - mean * mean, 0.0)
    scale = g * jax.lax.rsqrt(var + EPS)          # padded channels: g=0 -> scale=0
    shift = b - mean * scale
    return scale, shift


def _bn_act(y, g, b, *, relu):
    scale, shift = _bn_scale_shift(y, g, b, 1.0 / y.shape[0])
    out = y * scale + shift
    if relu:
        out = jnp.maximum(out, 0.0)
    return out


# -----------------------------------------------------------------------------
# The fused BottleNeck kernel.
#   x_ref  : (M0, CP) f32    flattened NHWC input, lanes >= Cin are zero
#   xg_ref : (9, M1, CP) bf16 host-gathered input rows per 3x3 tap (stride & zero
#                             padding folded in; pad rows are zero)
#   mk_ref : (9, M1, 1) f32   1 for real rows, 0 for spatial-padding rows
#   w*_ref : bf16 weights padded to (CP, CP) / (9, CP, CP)
#   g*/b*  : (1, CP) f32 BN affine params (zero in padded lanes)
#   o_ref  : (M1, CP) f32    lane-dense output
# -----------------------------------------------------------------------------
def bottleneck_kernel(x_ref, xg_ref, mk_ref,
                      w1_ref, g1_ref, b1_ref,
                      w2_ref, g2_ref, b2_ref,
                      w3_ref, g3_ref, b3_ref,
                      ws_ref, gs_ref, bs_ref,
                      o_ref, *, proj):
    f32 = jnp.float32
    bf16 = jnp.bfloat16
    m0 = x_ref.shape[0]
    m1 = o_ref.shape[0]

    x = x_ref[...]                                   # (M0, CP) f32
    w1 = w1_ref[...]                                 # (CP, CP) bf16

    # ---- conv1 (1x1) over all M0 positions: only to get BN1 batch statistics ----
    y1 = jnp.dot(x.astype(bf16), w1, preferred_element_type=f32)           # (M0, CP)
    sc1, sh1 = _bn_scale_shift(y1, g1_ref[...], b1_ref[...], 1.0 / m0)

    # ---- conv2 (3x3, stride, pad=1) + BN + ReLU ---------------------------------
    # conv1 is 1x1 (pointwise over space) so it commutes with the spatial gather:
    # per tap, re-apply conv1 + BN1 + ReLU to the gathered rows, mask the zero-pad
    # rows back to exact zero, and accumulate one MXU dot with W2[tap] in f32.
    acc2 = jnp.zeros((m1, CP), f32)
    for t in range(9):
        yt = jnp.dot(xg_ref[t], w1, preferred_element_type=f32)            # (M1, CP)
        a1t = jnp.maximum(yt * sc1 + sh1, 0.0) * mk_ref[t]
        acc2 = acc2 + jnp.dot(a1t.astype(bf16), w2_ref[t],
                              preferred_element_type=f32)
    a2 = _bn_act(acc2, g2_ref[...], b2_ref[...], relu=True).astype(bf16)   # (M1, CP)

    # ---- conv3 (1x1) + BN --------------------------------------------------------
    y3 = jnp.dot(a2, w3_ref[...], preferred_element_type=f32)
    y3 = _bn_act(y3, g3_ref[...], b3_ref[...], relu=False)

    # ---- shortcut ----------------------------------------------------------------
    if proj:
        # Center tap (kh=kw=1) is exactly the (h*stride, w*stride) rows of x.
        ysc = jnp.dot(xg_ref[4], ws_ref[...], preferred_element_type=f32)
        sc = _bn_act(ysc, gs_ref[...], bs_ref[...], relu=False)
    else:
        sc = x                                        # identity (M1==M0, Cout==Cin)

    o_ref[...] = jnp.maximum(y3 + sc, 0.0)


def _bottleneck_call(x2d_p, xg, mk, kp, *, proj):
    m0 = x2d_p.shape[0]
    m1 = xg.shape[1]
    kern = functools.partial(bottleneck_kernel, proj=proj)
    return pl.pallas_call(
        kern,
        out_shape=jax.ShapeDtypeStruct((m1, CP), jnp.float32),
        grid=(1,),
        in_specs=[
            _full_spec((m0, CP)),
            _full_spec((9, m1, CP)),
            _full_spec((9, m1, 1)),
            _full_spec((CP, CP)), _full_spec((1, CP)), _full_spec((1, CP)),
            _full_spec((9, CP, CP)), _full_spec((1, CP)), _full_spec((1, CP)),
            _full_spec((CP, CP)), _full_spec((1, CP)), _full_spec((1, CP)),
            _full_spec((CP, CP)), _full_spec((1, CP)), _full_spec((1, CP)),
        ],
        out_specs=_full_spec((m1, CP)),
        compiler_params=pltpu.CompilerParams(dimension_semantics=("arbitrary",)),
    )(x2d_p, xg, mk,
      kp["w1"], kp["g1"], kp["b1"],
      kp["w2"], kp["g2"], kp["b2"],
      kp["w3"], kp["g3"], kp["b3"],
      kp["ws"], kp["gs"], kp["bs"])


# -----------------------------------------------------------------------------
# Host-side constant construction
# -----------------------------------------------------------------------------
def build_gather_indices(N, H, W, stride):
    """Per-tap flattened input-row index (0 for pad) and validity mask (0/1)."""
    Ho = (H + 2 - 3) // stride + 1
    Wo = (W + 2 - 3) // stride + 1
    M1 = N * Ho * Wo
    idx = np.zeros((9, M1), np.int32)
    msk = np.zeros((9, M1), np.float32)
    for kh in range(3):
        for kw in range(3):
            t = kh * 3 + kw
            for n in range(N):
                for ho in range(Ho):
                    hi = ho * stride + kh - 1
                    for wo in range(Wo):
                        wi = wo * stride + kw - 1
                        o = (n * Ho + ho) * Wo + wo
                        if 0 <= hi < H and 0 <= wi < W:
                            idx[t, o] = (n * H + hi) * W + wi
                            msk[t, o] = 1.0
    return idx, msk, Ho, Wo


def pack_params(w1_t, w2_t, w3_t, ws_t, g1, b1, g2, b2, g3, b3, gs, bs,
                *, cin, cmid, cout, proj):
    """Torch-layout (OIHW) weights + BN params -> padded, bf16 kernel layout."""
    def padw(w2d):                      # (K, C) -> (CP, CP) bf16
        out = np.zeros((CP, CP), np.float32)
        out[: w2d.shape[0], : w2d.shape[1]] = w2d
        return jnp.asarray(out, jnp.bfloat16)

    def padv(v):                        # (C,) -> (1, CP) f32, zeros elsewhere
        out = np.zeros((1, CP), np.float32)
        out[0, : v.shape[0]] = v
        return jnp.asarray(out, jnp.float32)

    w1 = np.asarray(w1_t)[:, :, 0, 0].T                      # (Cin, Cmid)
    w3 = np.asarray(w3_t)[:, :, 0, 0].T                      # (Cmid, Cout)
    w2_np = np.asarray(w2_t)                                 # (Cmid, Cmid, 3, 3) OIHW
    w2 = np.zeros((9, CP, CP), np.float32)
    for kh in range(3):
        for kw in range(3):
            w2[kh * 3 + kw, :cmid, :cmid] = w2_np[:, :, kh, kw].T
    ws = np.asarray(ws_t)[:, :, 0, 0].T if proj else np.zeros((1, 1), np.float32)

    return {
        "w1": padw(w1), "g1": padv(np.asarray(g1)), "b1": padv(np.asarray(b1)),
        "w2": jnp.asarray(w2, jnp.bfloat16),
        "g2": padv(np.asarray(g2)), "b2": padv(np.asarray(b2)),
        "w3": padw(w3), "g3": padv(np.asarray(g3)), "b3": padv(np.asarray(b3)),
        "ws": padw(ws), "gs": padv(np.asarray(gs)), "bs": padv(np.asarray(bs)),
        "proj": proj, "cout": cout,
    }


def bottleneck_forward(x_nchw, kp, stride):
    """NCHW in, NCHW out — matches the PyTorch module's forward (training-mode BN)."""
    N, Cin, H, W = x_nchw.shape
    cout = kp["cout"]
    proj = kp["proj"]

    x = jnp.transpose(x_nchw, (0, 2, 3, 1)).astype(jnp.float32)       # NHWC
    x2d = x.reshape(N * H * W, Cin)
    x2d_p = jnp.zeros((N * H * W, CP), jnp.float32).at[:, :Cin].set(x2d)

    idx_np, msk_np, Ho, Wo = build_gather_indices(N, H, W, stride)
    idx = jnp.asarray(idx_np)                                         # (9, M1)
    msk = jnp.asarray(msk_np)[:, :, None]                             # (9, M1, 1)

    # Wrapper-side im2col row gather of the *input* (stride & padding folded in).
    xg = (x2d_p[idx] * msk).astype(jnp.bfloat16)                      # (9, M1, CP)

    out_p = _bottleneck_call(x2d_p, xg, msk, kp, proj=proj)           # (M1, CP)
    out = out_p[:, :cout].reshape(N, Ho, Wo, cout)
    return jnp.transpose(out, (0, 3, 1, 2))                           # NCHW


# -----------------------------------------------------------------------------
# Pure-JAX reference (lax conv, same bf16-operand / f32-accumulate policy)
# -----------------------------------------------------------------------------
def _conv_ref(x, w, stride, padding):
    return jax.lax.conv_general_dilated(
        x.astype(jnp.bfloat16), w.astype(jnp.bfloat16),
        (stride, stride), [(padding, padding)] * 2,
        dimension_numbers=("NCHW", "OIHW", "NCHW"),
        preferred_element_type=jnp.float32)


def _bn_ref(x, g, b):
    m = x.mean(axis=(0, 2, 3), keepdims=True)
    v = jnp.square(x - m).mean(axis=(0, 2, 3), keepdims=True)
    return (x - m) * jax.lax.rsqrt(v + EPS) * g.reshape(1, -1, 1, 1) + b.reshape(1, -1, 1, 1)


def bottleneck_reference(x, tp, stride, proj):
    y = jnp.maximum(_bn_ref(_conv_ref(x, tp["w1_t"], 1, 0), tp["g1"], tp["b1"]), 0.0)
    y = jnp.maximum(_bn_ref(_conv_ref(y, tp["w2_t"], stride, 1), tp["g2"], tp["b2"]), 0.0)
    y = _bn_ref(_conv_ref(y, tp["w3_t"], 1, 0), tp["g3"], tp["b3"])
    s = _bn_ref(_conv_ref(x, tp["ws_t"], stride, 0), tp["gs"], tp["bs"]) if proj else x
    return jnp.maximum(y + s, 0.0)


# -----------------------------------------------------------------------------
def _make_case(key, *, n, cin, cmid, stride, h, w):
    cout = cmid * 4
    proj = (stride != 1) or (cin != cout)
    ks = jax.random.split(key, 12)
    w1_t = 0.1 * jax.random.normal(ks[0], (cmid, cin, 1, 1), jnp.float32)
    w2_t = 0.1 * jax.random.normal(ks[1], (cmid, cmid, 3, 3), jnp.float32)
    w3_t = 0.1 * jax.random.normal(ks[2], (cout, cmid, 1, 1), jnp.float32)
    ws_t = 0.1 * jax.random.normal(ks[3], (cout, cin, 1, 1), jnp.float32)
    g1 = 1.0 + 0.1 * jax.random.normal(ks[4], (cmid,), jnp.float32)
    b1 = 0.1 * jax.random.normal(ks[5], (cmid,), jnp.float32)
    g2 = 1.0 + 0.1 * jax.random.normal(ks[6], (cmid,), jnp.float32)
    b2 = 0.1 * jax.random.normal(ks[7], (cmid,), jnp.float32)
    g3 = 1.0 + 0.1 * jax.random.normal(ks[8], (cout,), jnp.float32)
    b3 = 0.1 * jax.random.normal(ks[9], (cout,), jnp.float32)
    gs = 1.0 + 0.1 * jax.random.normal(ks[10], (cout,), jnp.float32)
    bs = 0.1 * jax.random.normal(ks[11], (cout,), jnp.float32)
    x = jax.random.normal(jax.random.fold_in(key, 99), (n, cin, h, w), jnp.float32)
    kp = pack_params(w1_t, w2_t, w3_t, ws_t, g1, b1, g2, b2, g3, b3, gs, bs,
                     cin=cin, cmid=cmid, cout=cout, proj=proj)
    tp = dict(w1_t=w1_t, w2_t=w2_t, w3_t=w3_t, ws_t=ws_t, g1=g1, b1=b1,
              g2=g2, b2=b2, g3=g3, b3=b3, gs=gs, bs=bs)
    return x, kp, tp, stride, proj, cout


if __name__ == "__main__":
    key = jax.random.PRNGKey(0)
    # Tolerance accounts for bf16 MXU operands (f32 accumulation); structural errors
    # (wrong tap / stride / BN) would be O(1).
    TOL = 1e-2

    # Case 1: projection shortcut — BottleNeck(in=16, out=8, stride=2) -> Cout=32
    x, kp, tp, stride, proj, cout = _make_case(jax.random.fold_in(key, 0),
                                               n=2, cin=16, cmid=8, stride=2, h=8, w=8)
    out = jax.block_until_ready(bottleneck_forward(x, kp, stride))
    ref = jax.block_until_ready(bottleneck_reference(x, tp, stride, proj))
    assert out.shape == (2, cout, 4, 4), out.shape
    np.testing.assert_allclose(np.asarray(out), np.asarray(ref), rtol=TOL, atol=TOL)

    # Case 2: identity shortcut — BottleNeck(in=32, out=8, stride=1) -> Cout=32
    x, kp, tp, stride, proj, cout = _make_case(jax.random.fold_in(key, 1),
                                               n=2, cin=32, cmid=8, stride=1, h=8, w=8)
    out = jax.block_until_ready(bottleneck_forward(x, kp, stride))
    ref = jax.block_until_ready(bottleneck_reference(x, tp, stride, proj))
    assert out.shape == (2, cout, 8, 8), out.shape
    np.testing.assert_allclose(np.asarray(out), np.asarray(ref), rtol=TOL, atol=TOL)

    print("KERNEL_OK")
</pallas_src>

<mosaic_0001>
module attributes {stable_mosaic.version = 11 : i64} {
  func.func @bottleneck_kernel(%arg0: i32, %arg1: memref<128x128xf32, #tpu.memory_space<vmem>>, %arg2: memref<9x32x128xbf16, #tpu.memory_space<vmem>>, %arg3: memref<9x32x1xf32, #tpu.memory_space<vmem>>, %arg4: memref<128x128xbf16, #tpu.memory_space<vmem>>, %arg5: memref<1x128xf32, #tpu.memory_space<vmem>>, %arg6: memref<1x128xf32, #tpu.memory_space<vmem>>, %arg7: memref<9x128x128xbf16, #tpu.memory_space<vmem>>, %arg8: memref<1x128xf32, #tpu.memory_space<vmem>>, %arg9: memref<1x128xf32, #tpu.memory_space<vmem>>, %arg10: memref<128x128xbf16, #tpu.memory_space<vmem>>, %arg11: memref<1x128xf32, #tpu.memory_space<vmem>>, %arg12: memref<1x128xf32, #tpu.memory_space<vmem>>, %arg13: memref<128x128xbf16, #tpu.memory_space<vmem>>, %arg14: memref<1x128xf32, #tpu.memory_space<vmem>>, %arg15: memref<1x128xf32, #tpu.memory_space<vmem>>, %arg16: memref<32x128xf32, #tpu.memory_space<vmem>>) attributes {dimension_semantics = [#tpu.dimension_semantics<arbitrary>], iteration_bounds = array<i64: 1>, scalar_prefetch = 0 : i64, scratch_operands = 0 : i64, tpu.core_type = #tpu.core_type<tc>, window_params = [{pipeline_mode = #tpu.pipeline_mode<synchronous>, transform_indices = @transform_0, window_bounds = array<i64: 128, 128>}, {pipeline_mode = #tpu.pipeline_mode<synchronous>, transform_indices = @transform_1, window_bounds = array<i64: 9, 32, 128>}, {pipeline_mode = #tpu.pipeline_mode<synchronous>, transform_indices = @transform_2, window_bounds = array<i64: 9, 32, 1>}, {pipeline_mode = #tpu.pipeline_mode<synchronous>, transform_indices = @transform_3, window_bounds = array<i64: 128, 128>}, {pipeline_mode = #tpu.pipeline_mode<synchronous>, transform_indices = @transform_4, window_bounds = array<i64: 1, 128>}, {pipeline_mode = #tpu.pipeline_mode<synchronous>, transform_indices = @transform_5, window_bounds = array<i64: 1, 128>}, {pipeline_mode = #tpu.pipeline_mode<synchronous>, transform_indices = @transform_6, window_bounds = array<i64: 9, 128, 128>}, {pipeline_mode = #tpu.pipeline_mode<synchronous>, transform_indices = @transform_7, window_bounds = array<i64: 1, 128>}, {pipeline_mode = #tpu.pipeline_mode<synchronous>, transform_indices = @transform_8, window_bounds = array<i64: 1, 128>}, {pipeline_mode = #tpu.pipeline_mode<synchronous>, transform_indices = @transform_9, window_bounds = array<i64: 128, 128>}, {pipeline_mode = #tpu.pipeline_mode<synchronous>, transform_indices = @transform_10, window_bounds = array<i64: 1, 128>}, {pipeline_mode = #tpu.pipeline_mode<synchronous>, transform_indices = @transform_11, window_bounds = array<i64: 1, 128>}, {pipeline_mode = #tpu.pipeline_mode<synchronous>, transform_indices = @transform_12, window_bounds = array<i64: 128, 128>}, {pipeline_mode = #tpu.pipeline_mode<synchronous>, transform_indices = @transform_13, window_bounds = array<i64: 1, 128>}, {pipeline_mode = #tpu.pipeline_mode<synchronous>, transform_indices = @transform_14, window_bounds = array<i64: 1, 128>}, {pipeline_mode = #tpu.pipeline_mode<synchronous>, transform_indices = @transform_15, window_bounds = array<i64: 32, 128>}]} {
    %c0 = arith.constant 0 : index
    %c0_0 = arith.constant 0 : index
    %0 = vector.load %arg1[%c0, %c0_0] : memref<128x128xf32, #tpu.memory_space<vmem>>, vector<128x128xf32>
    %c0_1 = arith.constant 0 : index
    %c0_2 = arith.constant 0 : index
    %1 = vector.load %arg4[%c0_1, %c0_2] : memref<128x128xbf16, #tpu.memory_space<vmem>>, vector<128x128xbf16>
    %2 = arith.truncf %0 : vector<128x128xf32> to vector<128x128xbf16>
    %cst = arith.constant dense<0.000000e+00> : vector<128x128xf32>
    %3 = tpu.matmul %2, %1, %cst {dimension_numbers = #tpu.dot_dimension_numbers<[1], [0], [0], [1], [0, 0, 1, 1], [], []>} : vector<128x128xbf16>, vector<128x128xbf16>, vector<128x128xf32> -> vector<128x128xf32>
    %c0_3 = arith.constant 0 : index
    %c0_4 = arith.constant 0 : index
    %4 = vector.load %arg5[%c0_3, %c0_4] : memref<1x128xf32, #tpu.memory_space<vmem>>, vector<1x128xf32>
    %c0_5 = arith.constant 0 : index
    %c0_6 = arith.constant 0 : index
    %5 = vector.load %arg6[%c0_5, %c0_6] : memref<1x128xf32, #tpu.memory_space<vmem>>, vector<1x128xf32>
    %cst_7 = arith.constant dense<0.000000e+00> : vector<128xf32>
    %6 = vector.multi_reduction <add>, %3, %cst_7 [0] : vector<128x128xf32> to vector<128xf32>
    %7 = vector.shape_cast %6 : vector<128xf32> to vector<1x128xf32>
    %8 = arith.mulf %3, %3 : vector<128x128xf32>
    %cst_8 = arith.constant dense<0.000000e+00> : vector<128xf32>
    %9 = vector.multi_reduction <add>, %8, %cst_8 [0] : vector<128x128xf32> to vector<128xf32>
    %10 = vector.shape_cast %9 : vector<128xf32> to vector<1x128xf32>
    %cst_9 = arith.constant 7.812500e-03 : f32
    %11 = vector.broadcast %cst_9 : f32 to vector<1x128xf32>
    %12 = arith.mulf %7, %11 : vector<1x128xf32>
    %cst_10 = arith.constant 7.812500e-03 : f32
    %13 = vector.broadcast %cst_10 : f32 to vector<1x128xf32>
    %14 = arith.mulf %10, %13 : vector<1x128xf32>
    %15 = arith.mulf %12, %12 : vector<1x128xf32>
    %16 = arith.subf %14, %15 : vector<1x128xf32>
    %cst_11 = arith.constant 0.000000e+00 : f32
    %17 = vector.broadcast %cst_11 : f32 to vector<1x128xf32>
    %18 = arith.maximumf %16, %17 : vector<1x128xf32>
    %cst_12 = arith.constant 9.99999974E-6 : f32
    %19 = vector.broadcast %cst_12 : f32 to vector<1x128xf32>
    %20 = arith.addf %18, %19 : vector<1x128xf32>
    %21 = math.rsqrt %20 : vector<1x128xf32>
    %22 = arith.mulf %4, %21 : vector<1x128xf32>
    %23 = arith.mulf %12, %22 : vector<1x128xf32>
    %24 = arith.subf %5, %23 : vector<1x128xf32>
    %cst_13 = arith.constant 0.000000e+00 : f32
    %25 = vector.broadcast %cst_13 : f32 to vector<32x128xf32>
    %c0_14 = arith.constant 0 : index
    %c0_15 = arith.constant 0 : index
    %c0_16 = arith.constant 0 : index
    %26 = vector.load %arg2[%c0_14, %c0_15, %c0_16] : memref<9x32x128xbf16, #tpu.memory_space<vmem>>, vector<1x32x128xbf16>
    %27 = vector.shape_cast %26 : vector<1x32x128xbf16> to vector<32x128xbf16>
    %cst_17 = arith.constant dense<0.000000e+00> : vector<32x128xf32>
    %28 = tpu.matmul %27, %1, %cst_17 {dimension_numbers = #tpu.dot_dimension_numbers<[1], [0], [0], [1], [0, 0, 1, 1], [], []>} : vector<32x128xbf16>, vector<128x128xbf16>, vector<32x128xf32> -> vector<32x128xf32>
    %29 = vector.broadcast %22 : vector<1x128xf32> to vector<32x128xf32>
    %30 = arith.mulf %28, %29 : vector<32x128xf32>
    %31 = vector.broadcast %24 : vector<1x128xf32> to vector<32x128xf32>
    %32 = arith.addf %30, %31 : vector<32x128xf32>
    %cst_18 = arith.constant 0.000000e+00 : f32
    %33 = vector.broadcast %cst_18 : f32 to vector<32x128xf32>
    %34 = arith.maximumf %32, %33 : vector<32x128xf32>
    %c0_19 = arith.constant 0 : index
    %c0_20 = arith.constant 0 : index
    %c0_21 = arith.constant 0 : index
    %35 = vector.load %arg3[%c0_19, %c0_20, %c0_21] : memref<9x32x1xf32, #tpu.memory_space<vmem>>, vector<1x32x1xf32>
    %36 = vector.shape_cast %35 : vector<1x32x1xf32> to vector<32x1xf32>
    %37 = vector.broadcast %36 : vector<32x1xf32> to vector<32x128xf32>
    %38 = arith.mulf %34, %37 : vector<32x128xf32>
    %39 = arith.truncf %38 : vector<32x128xf32> to vector<32x128xbf16>
    %c0_22 = arith.constant 0 : index
    %c0_23 = arith.constant 0 : index
    %c0_24 = arith.constant 0 : index
    %40 = vector.load %arg7[%c0_22, %c0_23, %c0_24] : memref<9x128x128xbf16, #tpu.memory_space<vmem>>, vector<1x128x128xbf16>
    %41 = vector.shape_cast %40 : vector<1x128x128xbf16> to vector<128x128xbf16>
    %cst_25 = arith.constant dense<0.000000e+00> : vector<32x128xf32>
    %42 = tpu.matmul %39, %41, %cst_25 {dimension_numbers = #tpu.dot_dimension_numbers<[1], [0], [0], [1], [0, 0, 1, 1], [], []>} : vector<32x128xbf16>, vector<128x128xbf16>, vector<32x128xf32> -> vector<32x128xf32>
    %43 = arith.addf %25, %42 : vector<32x128xf32>
    %c1 = arith.constant 1 : index
    %c0_26 = arith.constant 0 : index
    %c0_27 = arith.constant 0 : index
    %44 = vector.load %arg2[%c1, %c0_26, %c0_27] : memref<9x32x128xbf16, #tpu.memory_space<vmem>>, vector<1x32x128xbf16>
    %45 = vector.shape_cast %44 : vector<1x32x128xbf16> to vector<32x128xbf16>
    %cst_28 = arith.constant dense<0.000000e+00> : vector<32x128xf32>
    %46 = tpu.matmul %45, %1, %cst_28 {dimension_numbers = #tpu.dot_dimension_numbers<[1], [0], [0], [1], [0, 0, 1, 1], [], []>} : vector<32x128xbf16>, vector<128x128xbf16>, vector<32x128xf32> -> vector<32x128xf32>
    %47 = vector.broadcast %22 : vector<1x128xf32> to vector<32x128xf32>
    %48 = arith.mulf %46, %47 : vector<32x128xf32>
    %49 = vector.broadcast %24 : vector<1x128xf32> to vector<32x128xf32>
    %50 = arith.addf %48, %49 : vector<32x128xf32>
    %cst_29 = arith.constant 0.000000e+00 : f32
    %51 = vector.broadcast %cst_29 : f32 to vector<32x128xf32>
    %52 = arith.maximumf %50, %51 : vector<32x128xf32>
    %c1_30 = arith.constant 1 : index
    %c0_31 = arith.constant 0 : index
    %c0_32 = arith.constant 0 : index
    %53 = vector.load %arg3[%c1_30, %c0_31, %c0_32] : memref<9x32x1xf32, #tpu.memory_space<vmem>>, vector<1x32x1xf32>
    %54 = vector.shape_cast %53 : vector<1x32x1xf32> to vector<32x1xf32>
    %55 = vector.broadcast %54 : vector<32x1xf32> to vector<32x128xf32>
    %56 = arith.mulf %52, %55 : vector<32x128xf32>
    %57 = arith.truncf %56 : vector<32x128xf32> to vector<32x128xbf16>
    %c1_33 = arith.constant 1 : index
    %c0_34 = arith.constant 0 : index
    %c0_35 = arith.constant 0 : index
    %58 = vector.load %arg7[%c1_33, %c0_34, %c0_35] : memref<9x128x128xbf16, #tpu.memory_space<vmem>>, vector<1x128x128xbf16>
    %59 = vector.shape_cast %58 : vector<1x128x128xbf16> to vector<128x128xbf16>
    %cst_36 = arith.constant dense<0.000000e+00> : vector<32x128xf32>
    %60 = tpu.matmul %57, %59, %cst_36 {dimension_numbers = #tpu.dot_dimension_numbers<[1], [0], [0], [1], [0, 0, 1, 1], [], []>} : vector<32x128xbf16>, vector<128x128xbf16>, vector<32x128xf32> -> vector<32x128xf32>
    %61 = arith.addf %43, %60 : vector<32x128xf32>
    %c2 = arith.constant 2 : index
    %c0_37 = arith.constant 0 : index
    %c0_38 = arith.constant 0 : index
    %62 = vector.load %arg2[%c2, %c0_37, %c0_38] : memref<9x32x128xbf16, #tpu.memory_space<vmem>>, vector<1x32x128xbf16>
    %63 = vector.shape_cast %62 : vector<1x32x128xbf16> to vector<32x128xbf16>
    %cst_39 = arith.constant dense<0.000000e+00> : vector<32x128xf32>
    %64 = tpu.matmul %63, %1, %cst_39 {dimension_numbers = #tpu.dot_dimension_numbers<[1], [0], [0], [1], [0, 0, 1, 1], [], []>} : vector<32x128xbf16>, vector<128x128xbf16>, vector<32x128xf32> -> vector<32x128xf32>
    %65 = vector.broadcast %22 : vector<1x128xf32> to vector<32x128xf32>
    %66 = arith.mulf %64, %65 : vector<32x128xf32>
    %67 = vector.broadcast %24 : vector<1x128xf32> to vector<32x128xf32>
    %68 = arith.addf %66, %67 : vector<32x128xf32>
    %cst_40 = arith.constant 0.000000e+00 : f32
    %69 = vector.broadcast %cst_40 : f32 to vector<32x128xf32>
    %70 = arith.maximumf %68, %69 : vector<32x128xf32>
    %c2_41 = arith.constant 2 : index
    %c0_42 = arith.constant 0 : index
    %c0_43 = arith.constant 0 : index
    %71 = vector.load %arg3[%c2_41, %c0_42, %c0_43] : memref<9x32x1xf32, #tpu.memory_space<vmem>>, vector<1x32x1xf32>
    %72 = vector.shape_cast %71 : vector<1x32x1xf32> to vector<32x1xf32>
    %73 = vector.broadcast %72 : vector<32x1xf32> to vector<32x128xf32>
    %74 = arith.mulf %70, %73 : vector<32x128xf32>
    %75 = arith.truncf %74 : vector<32x128xf32> to vector<32x128xbf16>
    %c2_44 = arith.constant 2 : index
    %c0_45 = arith.constant 0 : index
    %c0_46 = arith.constant 0 : index
    %76 = vector.load %arg7[%c2_44, %c0_45, %c0_46] : memref<9x128x128xbf16, #tpu.memory_space<vmem>>, vector<1x128x128xbf16>
    %77 = vector.shape_cast %76 : vector<1x128x128xbf16> to vector<128x128xbf16>
    %cst_47 = arith.constant dense<0.000000e+00> : vector<32x128xf32>
    %78 = tpu.matmul %75, %77, %cst_47 {dimension_numbers = #tpu.dot_dimension_numbers<[1], [0], [0], [1], [0, 0, 1, 1], [], []>} : vector<32x128xbf16>, vector<128x128xbf16>, vector<32x128xf32> -> vector<32x128xf32>
    %79 = arith.addf %61, %78 : vector<32x128xf32>
    %c3 = arith.constant 3 : index
    %c0_48 = arith.constant 0 : index
    %c0_49 = arith.constant 0 : index
    %80 = vector.load %arg2[%c3, %c0_48, %c0_49] : memref<9x32x128xbf16, #tpu.memory_space<vmem>>, vector<1x32x128xbf16>
    %81 = vector.shape_cast %80 : vector<1x32x128xbf16> to vector<32x128xbf16>
    %cst_50 = arith.constant dense<0.000000e+00> : vector<32x128xf32>
    %82 = tpu.matmul %81, %1, %cst_50 {dimension_numbers = #tpu.dot_dimension_numbers<[1], [0], [0], [1], [0, 0, 1, 1], [], []>} : vector<32x128xbf16>, vector<128x128xbf16>, vector<32x128xf32> -> vector<32x128xf32>
    %83 = vector.broadcast %22 : vector<1x128xf32> to vector<32x128xf32>
    %84 = arith.mulf %82, %83 : vector<32x128xf32>
    %85 = vector.broadcast %24 : vector<1x128xf32> to vector<32x128xf32>
    %86 = arith.addf %84, %85 : vector<32x128xf32>
    %cst_51 = arith.constant 0.000000e+00 : f32
    %87 = vector.broadcast %cst_51 : f32 to vector<32x128xf32>
    %88 = arith.maximumf %86, %87 : vector<32x128xf32>
    %c3_52 = arith.constant 3 : index
    %c0_53 = arith.constant 0 : index
    %c0_54 = arith.constant 0 : index
    %89 = vector.load %arg3[%c3_52, %c0_53, %c0_54] : memref<9x32x1xf32, #tpu.memory_space<vmem>>, vector<1x32x1xf32>
    %90 = vector.shape_cast %89 : vector<1x32x1xf32> to vector<32x1xf32>
    %91 = vector.broadcast %90 : vector<32x1xf32> to vector<32x128xf32>
    %92 = arith.mulf %88, %91 : vector<32x128xf32>
    %93 = arith.truncf %92 : vector<32x128xf32> to vector<32x128xbf16>
    %c3_55 = arith.constant 3 : index
    %c0_56 = arith.constant 0 : index
    %c0_57 = arith.constant 0 : index
    %94 = vector.load %arg7[%c3_55, %c0_56, %c0_57] : memref<9x128x128xbf16, #tpu.memory_space<vmem>>, vector<1x128x128xbf16>
    %95 = vector.shape_cast %94 : vector<1x128x128xbf16> to vector<128x128xbf16>
    %cst_58 = arith.constant dense<0.000000e+00> : vector<32x128xf32>
    %96 = tpu.matmul %93, %95, %cst_58 {dimension_numbers = #tpu.dot_dimension_numbers<[1], [0], [0], [1], [0, 0, 1, 1], [], []>} : vector<32x128xbf16>, vector<128x128xbf16>, vector<32x128xf32> -> vector<32x128xf32>
    %97 = arith.addf %79, %96 : vector<32x128xf32>
    %c4 = arith.constant 4 : index
    %c0_59 = arith.constant 0 : index
    %c0_60 = arith.constant 0 : index
    %98 = vector.load %arg2[%c4, %c0_59, %c0_60] : memref<9x32x128xbf16, #tpu.memory_space<vmem>>, vector<1x32x128xbf16>
    %99 = vector.shape_cast %98 : vector<1x32x128xbf16> to vector<32x128xbf16>
    %cst_61 = arith.constant dense<0.000000e+00> : vector<32x128xf32>
    %100 = tpu.matmul %99, %1, %cst_61 {dimension_numbers = #tpu.dot_dimension_numbers<[1], [0], [0], [1], [0, 0, 1, 1], [], []>} : vector<32x128xbf16>, vector<128x128xbf16>, vector<32x128xf32> -> vector<32x128xf32>
    %101 = vector.broadcast %22 : vector<1x128xf32> to vector<32x128xf32>
    %102 = arith.mulf %100, %101 : vector<32x128xf32>
    %103 = vector.broadcast %24 : vector<1x128xf32> to vector<32x128xf32>
    %104 = arith.addf %102, %103 : vector<32x128xf32>
    %cst_62 = arith.constant 0.000000e+00 : f32
    %105 = vector.broadcast %cst_62 : f32 to vector<32x128xf32>
    %106 = arith.maximumf %104, %105 : vector<32x128xf32>
    %c4_63 = arith.constant 4 : index
    %c0_64 = arith.constant 0 : index
    %c0_65 = arith.constant 0 : index
    %107 = vector.load %arg3[%c4_63, %c0_64, %c0_65] : memref<9x32x1xf32, #tpu.memory_space<vmem>>, vector<1x32x1xf32>
    %108 = vector.shape_cast %107 : vector<1x32x1xf32> to vector<32x1xf32>
    %109 = vector.broadcast %108 : vector<32x1xf32> to vector<32x128xf32>
    %110 = arith.mulf %106, %109 : vector<32x128xf32>
    %111 = arith.truncf %110 : vector<32x128xf32> to vector<32x128xbf16>
    %c4_66 = arith.constant 4 : index
    %c0_67 = arith.constant 0 : index
    %c0_68 = arith.constant 0 : index
    %112 = vector.load %arg7[%c4_66, %c0_67, %c0_68] : memref<9x128x128xbf16, #tpu.memory_space<vmem>>, vector<1x128x128xbf16>
    %113 = vector.shape_cast %112 : vector<1x128x128xbf16> to vector<128x128xbf16>
    %cst_69 = arith.constant dense<0.000000e+00> : vector<32x128xf32>
    %114 = tpu.matmul %111, %113, %cst_69 {dimension_numbers = #tpu.dot_dimension_numbers<[1], [0], [0], [1], [0, 0, 1, 1], [], []>} : vector<32x128xbf16>, vector<128x128xbf16>, vector<32x128xf32> -> vector<32x128xf32>
    %115 = arith.addf %97, %114 : vector<32x128xf32>
    %c5 = arith.constant 5 : index
    %c0_70 = arith.constant 0 : index
    %c0_71 = arith.constant 0 : index
    %116 = vector.load %arg2[%c5, %c0_70, %c0_71] : memref<9x32x128xbf16, #tpu.memory_space<vmem>>, vector<1x32x128xbf16>
    %117 = vector.shape_cast %116 : vector<1x32x128xbf16> to vector<32x128xbf16>
    %cst_72 = arith.constant dense<0.000000e+00> : vector<32x128xf32>
    %118 = tpu.matmul %117, %1, %cst_72 {dimension_numbers = #tpu.dot_dimension_numbers<[1], [0], [0], [1], [0, 0, 1, 1], [], []>} : vector<32x128xbf16>, vector<128x128xbf16>, vector<32x128xf32> -> vector<32x128xf32>
    %119 = vector.broadcast %22 : vector<1x128xf32> to vector<32x128xf32>
    %120 = arith.mulf %118, %119 : vector<32x128xf32>
    %121 = vector.broadcast %24 : vector<1x128xf32> to vector<32x128xf32>
    %122 = arith.addf %120, %121 : vector<32x128xf32>
    %cst_73 = arith.constant 0.000000e+00 : f32
    %123 = vector.broadcast %cst_73 : f32 to vector<32x128xf32>
    %124 = arith.maximumf %122, %123 : vector<32x128xf32>
    %c5_74 = arith.constant 5 : index
    %c0_75 = arith.constant 0 : index
    %c0_76 = arith.constant 0 : index
    %125 = vector.load %arg3[%c5_74, %c0_75, %c0_76] : memref<9x32x1xf32, #tpu.memory_space<vmem>>, vector<1x32x1xf32>
    %126 = vector.shape_cast %125 : vector<1x32x1xf32> to vector<32x1xf32>
    %127 = vector.broadcast %126 : vector<32x1xf32> to vector<32x128xf32>
    %128 = arith.mulf %124, %127 : vector<32x128xf32>
    %129 = arith.truncf %128 : vector<32x128xf32> to vector<32x128xbf16>
    %c5_77 = arith.constant 5 : index
    %c0_78 = arith.constant 0 : index
    %c0_79 = arith.constant 0 : index
    %130 = vector.load %arg7[%c5_77, %c0_78, %c0_79] : memref<9x128x128xbf16, #tpu.memory_space<vmem>>, vector<1x128x128xbf16>
    %131 = vector.shape_cast %130 : vector<1x128x128xbf16> to vector<128x128xbf16>
    %cst_80 = arith.constant dense<0.000000e+00> : vector<32x128xf32>
    %132 = tpu.matmul %129, %131, %cst_80 {dimension_numbers = #tpu.dot_dimension_numbers<[1], [0], [0], [1], [0, 0, 1, 1], [], []>} : vector<32x128xbf16>, vector<128x128xbf16>, vector<32x128xf32> -> vector<32x128xf32>
    %133 = arith.addf %115, %132 : vector<32x128xf32>
    %c6 = arith.constant 6 : index
    %c0_81 = arith.constant 0 : index
    %c0_82 = arith.constant 0 : index
    %134 = vector.load %arg2[%c6, %c0_81, %c0_82] : memref<9x32x128xbf16, #tpu.memory_space<vmem>>, vector<1x32x128xbf16>
    %135 = vector.shape_cast %134 : vector<1x32x128xbf16> to vector<32x128xbf16>
    %cst_83 = arith.constant dense<0.000000e+00> : vector<32x128xf32>
    %136 = tpu.matmul %135, %1, %cst_83 {dimension_numbers = #tpu.dot_dimension_numbers<[1], [0], [0], [1], [0, 0, 1, 1], [], []>} : vector<32x128xbf16>, vector<128x128xbf16>, vector<32x128xf32> -> vector<32x128xf32>
    %137 = vector.broadcast %22 : vector<1x128xf32> to vector<32x128xf32>
    %138 = arith.mulf %136, %137 : vector<32x128xf32>
    %139 = vector.broadcast %24 : vector<1x128xf32> to vector<32x128xf32>
    %140 = arith.addf %138, %139 : vector<32x128xf32>
    %cst_84 = arith.constant 0.000000e+00 : f32
    %141 = vector.broadcast %cst_84 : f32 to vector<32x128xf32>
    %142 = arith.maximumf %140, %141 : vector<32x128xf32>
    %c6_85 = arith.constant 6 : index
    %c0_86 = arith.constant 0 : index
    %c0_87 = arith.constant 0 : index
    %143 = vector.load %arg3[%c6_85, %c0_86, %c0_87] : memref<9x32x1xf32, #tpu.memory_space<vmem>>, vector<1x32x1xf32>
    %144 = vector.shape_cast %143 : vector<1x32x1xf32> to vector<32x1xf32>
    %145 = vector.broadcast %144 : vector<32x1xf32> to vector<32x128xf32>
    %146 = arith.mulf %142, %145 : vector<32x128xf32>
    %147 = arith.truncf %146 : vector<32x128xf32> to vector<32x128xbf16>
    %c6_88 = arith.constant 6 : index
    %c0_89 = arith.constant 0 : index
    %c0_90 = arith.constant 0 : index
    %148 = vector.load %arg7[%c6_88, %c0_89, %c0_90] : memref<9x128x128xbf16, #tpu.memory_space<vmem>>, vector<1x128x128xbf16>
    %149 = vector.shape_cast %148 : vector<1x128x128xbf16> to vector<128x128xbf16>
    %cst_91 = arith.constant dense<0.000000e+00> : vector<32x128xf32>
    %150 = tpu.matmul %147, %149, %cst_91 {dimension_numbers = #tpu.dot_dimension_numbers<[1], [0], [0], [1], [0, 0, 1, 1], [], []>} : vector<32x128xbf16>, vector<128x128xbf16>, vector<32x128xf32> -> vector<32x128xf32>
    %151 = arith.addf %133, %150 : vector<32x128xf32>
    %c7 = arith.constant 7 : index
    %c0_92 = arith.constant 0 : index
    %c0_93 = arith.constant 0 : index
    %152 = vector.load %arg2[%c7, %c0_92, %c0_93] : memref<9x32x128xbf16, #tpu.memory_space<vmem>>, vector<1x32x128xbf16>
    %153 = vector.shape_cast %152 : vector<1x32x128xbf16> to vector<32x128xbf16>
    %cst_94 = arith.constant dense<0.000000e+00> : vector<32x128xf32>
    %154 = tpu.matmul %153, %1, %cst_94 {dimension_numbers = #tpu.dot_dimension_numbers<[1], [0], [0], [1], [0, 0, 1, 1], [], []>} : vector<32x128xbf16>, vector<128x128xbf16>, vector<32x128xf32> -> vector<32x128xf32>
    %155 = vector.broadcast %22 : vector<1x128xf32> to vector<32x128xf32>
    %156 = arith.mulf %154, %155 : vector<32x128xf32>
    %157 = vector.broadcast %24 : vector<1x128xf32> to vector<32x128xf32>
    %158 = arith.addf %156, %157 : vector<32x128xf32>
    %cst_95 = arith.constant 0.000000e+00 : f32
    %159 = vector.broadcast %cst_95 : f32 to vector<32x128xf32>
    %160 = arith.maximumf %158, %159 : vector<32x128xf32>
    %c7_96 = arith.constant 7 : index
    %c0_97 = arith.constant 0 : index
    %c0_98 = arith.constant 0 : index
    %161 = vector.load %arg3[%c7_96, %c0_97, %c0_98] : memref<9x32x1xf32, #tpu.memory_space<vmem>>, vector<1x32x1xf32>
    %162 = vector.shape_cast %161 : vector<1x32x1xf32> to vector<32x1xf32>
    %163 = vector.broadcast %162 : vector<32x1xf32> to vector<32x128xf32>
    %164 = arith.mulf %160, %163 : vector<32x128xf32>
    %165 = arith.truncf %164 : vector<32x128xf32> to vector<32x128xbf16>
    %c7_99 = arith.constant 7 : index
    %c0_100 = arith.constant 0 : index
    %c0_101 = arith.constant 0 : index
    %166 = vector.load %arg7[%c7_99, %c0_100, %c0_101] : memref<9x128x128xbf16, #tpu.memory_space<vmem>>, vector<1x128x128xbf16>
    %167 = vector.shape_cast %166 : vector<1x128x128xbf16> to vector<128x128xbf16>
    %cst_102 = arith.constant dense<0.000000e+00> : vector<32x128xf32>
    %168 = tpu.matmul %165, %167, %cst_102 {dimension_numbers = #tpu.dot_dimension_numbers<[1], [0], [0], [1], [0, 0, 1, 1], [], []>} : vector<32x128xbf16>, vector<128x128xbf16>, vector<32x128xf32> -> vector<32x128xf32>
    %169 = arith.addf %151, %168 : vector<32x128xf32>
    %c8 = arith.constant 8 : index
    %c0_103 = arith.constant 0 : index
    %c0_104 = arith.constant 0 : index
    %170 = vector.load %arg2[%c8, %c0_103, %c0_104] : memref<9x32x128xbf16, #tpu.memory_space<vmem>>, vector<1x32x128xbf16>
    %171 = vector.shape_cast %170 : vector<1x32x128xbf16> to vector<32x128xbf16>
    %cst_105 = arith.constant dense<0.000000e+00> : vector<32x128xf32>
    %172 = tpu.matmul %171, %1, %cst_105 {dimension_numbers = #tpu.dot_dimension_numbers<[1], [0], [0], [1], [0, 0, 1, 1], [], []>} : vector<32x128xbf16>, vector<128x128xbf16>, vector<32x128xf32> -> vector<32x128xf32>
    %173 = vector.broadcast %22 : vector<1x128xf32> to vector<32x128xf32>
    %174 = arith.mulf %172, %173 : vector<32x128xf32>
    %175 = vector.broadcast %24 : vector<1x128xf32> to vector<32x128xf32>
    %176 = arith.addf %174, %175 : vector<32x128xf32>
    %cst_106 = arith.constant 0.000000e+00 : f32
    %177 = vector.broadcast %cst_106 : f32 to vector<32x128xf32>
    %178 = arith.maximumf %176, %177 : vector<32x128xf32>
    %c8_107 = arith.constant 8 : index
    %c0_108 = arith.constant 0 : index
    %c0_109 = arith.constant 0 : index
    %179 = vector.load %arg3[%c8_107, %c0_108, %c0_109] : memref<9x32x1xf32, #tpu.memory_space<vmem>>, vector<1x32x1xf32>
    %180 = vector.shape_cast %179 : vector<1x32x1xf32> to vector<32x1xf32>
    %181 = vector.broadcast %180 : vector<32x1xf32> to vector<32x128xf32>
    %182 = arith.mulf %178, %181 : vector<32x128xf32>
    %183 = arith.truncf %182 : vector<32x128xf32> to vector<32x128xbf16>
    %c8_110 = arith.constant 8 : index
    %c0_111 = arith.constant 0 : index
    %c0_112 = arith.constant 0 : index
    %184 = vector.load %arg7[%c8_110, %c0_111, %c0_112] : memref<9x128x128xbf16, #tpu.memory_space<vmem>>, vector<1x128x128xbf16>
    %185 = vector.shape_cast %184 : vector<1x128x128xbf16> to vector<128x128xbf16>
    %cst_113 = arith.constant dense<0.000000e+00> : vector<32x128xf32>
    %186 = tpu.matmul %183, %185, %cst_113 {dimension_numbers = #tpu.dot_dimension_numbers<[1], [0], [0], [1], [0, 0, 1, 1], [], []>} : vector<32x128xbf16>, vector<128x128xbf16>, vector<32x128xf32> -> vector<32x128xf32>
    %187 = arith.addf %169, %186 : vector<32x128xf32>
    %c0_114 = arith.constant 0 : index
    %c0_115 = arith.constant 0 : index
    %188 = vector.load %arg8[%c0_114, %c0_115] : memref<1x128xf32, #tpu.memory_space<vmem>>, vector<1x128xf32>
    %c0_116 = arith.constant 0 : index
    %c0_117 = arith.constant 0 : index
    %189 = vector.load %arg9[%c0_116, %c0_117] : memref<1x128xf32, #tpu.memory_space<vmem>>, vector<1x128xf32>
    %cst_118 = arith.constant dense<0.000000e+00> : vector<128xf32>
    %190 = vector.multi_reduction <add>, %187, %cst_118 [0] : vector<32x128xf32> to vector<128xf32>
    %191 = vector.shape_cast %190 : vector<128xf32> to vector<1x128xf32>
    %192 = arith.mulf %187, %187 : vector<32x128xf32>
    %cst_119 = arith.constant dense<0.000000e+00> : vector<128xf32>
    %193 = vector.multi_reduction <add>, %192, %cst_119 [0] : vector<32x128xf32> to vector<128xf32>
    %194 = vector.shape_cast %193 : vector<128xf32> to vector<1x128xf32>
    %cst_120 = arith.constant 3.125000e-02 : f32
    %195 = vector.broadcast %cst_120 : f32 to vector<1x128xf32>
    %196 = arith.mulf %191, %195 : vector<1x128xf32>
    %cst_121 = arith.constant 3.125000e-02 : f32
    %197 = vector.broadcast %cst_121 : f32 to vector<1x128xf32>
    %198 = arith.mulf %194, %197 : vector<1x128xf32>
    %199 = arith.mulf %196, %196 : vector<1x128xf32>
    %200 = arith.subf %198, %199 : vector<1x128xf32>
    %cst_122 = arith.constant 0.000000e+00 : f32
    %201 = vector.broadcast %cst_122 : f32 to vector<1x128xf32>
    %202 = arith.maximumf %200, %201 : vector<1x128xf32>
    %cst_123 = arith.constant 9.99999974E-6 : f32
    %203 = vector.broadcast %cst_123 : f32 to vector<1x128xf32>
    %204 = arith.addf %202, %203 : vector<1x128xf32>
    %205 = math.rsqrt %204 : vector<1x128xf32>
    %206 = arith.mulf %188, %205 : vector<1x128xf32>
    %207 = arith.mulf %196, %206 : vector<1x128xf32>
    %208 = arith.subf %189, %207 : vector<1x128xf32>
    %209 = vector.broadcast %206 : vector<1x128xf32> to vector<32x128xf32>
    %210 = arith.mulf %187, %209 : vector<32x128xf32>
    %211 = vector.broadcast %208 : vector<1x128xf32> to vector<32x128xf32>
    %212 = arith.addf %210, %211 : vector<32x128xf32>
    %cst_124 = arith.constant 0.000000e+00 : f32
    %213 = vector.broadcast %cst_124 : f32 to vector<32x128xf32>
    %214 = arith.maximumf %212, %213 : vector<32x128xf32>
    %215 = arith.truncf %214 : vector<32x128xf32> to vector<32x128xbf16>
    %c0_125 = arith.constant 0 : index
    %c0_126 = arith.constant 0 : index
    %216 = vector.load %arg10[%c0_125, %c0_126] : memref<128x128xbf16, #tpu.memory_space<vmem>>, vector<128x128xbf16>
    %cst_127 = arith.constant dense<0.000000e+00> : vector<32x128xf32>
    %217 = tpu.matmul %215, %216, %cst_127 {dimension_numbers = #tpu.dot_dimension_numbers<[1], [0], [0], [1], [0, 0, 1, 1], [], []>} : vector<32x128xbf16>, vector<128x128xbf16>, vector<32x128xf32> -> vector<32x128xf32>
    %c0_128 = arith.constant 0 : index
    %c0_129 = arith.constant 0 : index
    %218 = vector.load %arg11[%c0_128, %c0_129] : memref<1x128xf32, #tpu.memory_space<vmem>>, vector<1x128xf32>
    %c0_130 = arith.constant 0 : index
    %c0_131 = arith.constant 0 : index
    %219 = vector.load %arg12[%c0_130, %c0_131] : memref<1x128xf32, #tpu.memory_space<vmem>>, vector<1x128xf32>
    %cst_132 = arith.constant dense<0.000000e+00> : vector<128xf32>
    %220 = vector.multi_reduction <add>, %217, %cst_132 [0] : vector<32x128xf32> to vector<128xf32>
    %221 = vector.shape_cast %220 : vector<128xf32> to vector<1x128xf32>
    %222 = arith.mulf %217, %217 : vector<32x128xf32>
    %cst_133 = arith.constant dense<0.000000e+00> : vector<128xf32>
    %223 = vector.multi_reduction <add>, %222, %cst_133 [0] : vector<32x128xf32> to vector<128xf32>
    %224 = vector.shape_cast %223 : vector<128xf32> to vector<1x128xf32>
    %cst_134 = arith.constant 3.125000e-02 : f32
    %225 = vector.broadcast %cst_134 : f32 to vector<1x128xf32>
    %226 = arith.mulf %221, %225 : vector<1x128xf32>
    %cst_135 = arith.constant 3.125000e-02 : f32
    %227 = vector.broadcast %cst_135 : f32 to vector<1x128xf32>
    %228 = arith.mulf %224, %227 : vector<1x128xf32>
    %229 = arith.mulf %226, %226 : vector<1x128xf32>
    %230 = arith.subf %228, %229 : vector<1x128xf32>
    %cst_136 = arith.constant 0.000000e+00 : f32
    %231 = vector.broadcast %cst_136 : f32 to vector<1x128xf32>
    %232 = arith.maximumf %230, %231 : vector<1x128xf32>
    %cst_137 = arith.constant 9.99999974E-6 : f32
    %233 = vector.broadcast %cst_137 : f32 to vector<1x128xf32>
    %234 = arith.addf %232, %233 : vector<1x128xf32>
    %235 = math.rsqrt %234 : vector<1x128xf32>
    %236 = arith.mulf %218, %235 : vector<1x128xf32>
    %237 = arith.mulf %226, %236 : vector<1x128xf32>
    %238 = arith.subf %219, %237 : vector<1x128xf32>
    %239 = vector.broadcast %236 : vector<1x128xf32> to vector<32x128xf32>
    %240 = arith.mulf %217, %239 : vector<32x128xf32>
    %241 = vector.broadcast %238 : vector<1x128xf32> to vector<32x128xf32>
    %242 = arith.addf %240, %241 : vector<32x128xf32>
    %c4_138 = arith.constant 4 : index
    %c0_139 = arith.constant 0 : index
    %c0_140 = arith.constant 0 : index
    %243 = vector.load %arg2[%c4_138, %c0_139, %c0_140] : memref<9x32x128xbf16, #tpu.memory_space<vmem>>, vector<1x32x128xbf16>
    %244 = vector.shape_cast %243 : vector<1x32x128xbf16> to vector<32x128xbf16>
    %c0_141 = arith.constant 0 : index
    %c0_142 = arith.constant 0 : index
    %245 = vector.load %arg13[%c0_141, %c0_142] : memref<128x128xbf16, #tpu.memory_space<vmem>>, vector<128x128xbf16>
    %cst_143 = arith.constant dense<0.000000e+00> : vector<32x128xf32>
    %246 = tpu.matmul %244, %245, %cst_143 {dimension_numbers = #tpu.dot_dimension_numbers<[1], [0], [0], [1], [0, 0, 1, 1], [], []>} : vector<32x128xbf16>, vector<128x128xbf16>, vector<32x128xf32> -> vector<32x128xf32>
    %c0_144 = arith.constant 0 : index
    %c0_145 = arith.constant 0 : index
    %247 = vector.load %arg14[%c0_144, %c0_145] : memref<1x128xf32, #tpu.memory_space<vmem>>, vector<1x128xf32>
    %c0_146 = arith.constant 0 : index
    %c0_147 = arith.constant 0 : index
    %248 = vector.load %arg15[%c0_146, %c0_147] : memref<1x128xf32, #tpu.memory_space<vmem>>, vector<1x128xf32>
    %cst_148 = arith.constant dense<0.000000e+00> : vector<128xf32>
    %249 = vector.multi_reduction <add>, %246, %cst_148 [0] : vector<32x128xf32> to vector<128xf32>
    %250 = vector.shape_cast %249 : vector<128xf32> to vector<1x128xf32>
    %251 = arith.mulf %246, %246 : vector<32x128xf32>
    %cst_149 = arith.constant dense<0.000000e+00> : vector<128xf32>
    %252 = vector.multi_reduction <add>, %251, %cst_149 [0] : vector<32x128xf32> to vector<128xf32>
    %253 = vector.shape_cast %252 : vector<128xf32> to vector<1x128xf32>
    %cst_150 = arith.constant 3.125000e-02 : f32
    %254 = vector.broadcast %cst_150 : f32 to vector<1x128xf32>
    %255 = arith.mulf %250, %254 : vector<1x128xf32>
    %cst_151 = arith.constant 3.125000e-02 : f32
    %256 = vector.broadcast %cst_151 : f32 to vector<1x128xf32>
    %257 = arith.mulf %253, %256 : vector<1x128xf32>
    %258 = arith.mulf %255, %255 : vector<1x128xf32>
    %259 = arith.subf %257, %258 : vector<1x128xf32>
    %cst_152 = arith.constant 0.000000e+00 : f32
    %260 = vector.broadcast %cst_152 : f32 to vector<1x128xf32>
    %261 = arith.maximumf %259, %260 : vector<1x128xf32>
    %cst_153 = arith.constant 9.99999974E-6 : f32
    %262 = vector.broadcast %cst_153 : f32 to vector<1x128xf32>
    %263 = arith.addf %261, %262 : vector<1x128xf32>
    %264 = math.rsqrt %263 : vector<1x128xf32>
    %265 = arith.mulf %247, %264 : vector<1x128xf32>
    %266 = arith.mulf %255, %265 : vector<1x128xf32>
    %267 = arith.subf %248, %266 : vector<1x128xf32>
    %268 = vector.broadcast %265 : vector<1x128xf32> to vector<32x128xf32>
    %269 = arith.mulf %246, %268 : vector<32x128xf32>
    %270 = vector.broadcast %267 : vector<1x128xf32> to vector<32x128xf32>
    %271 = arith.addf %269, %270 : vector<32x128xf32>
    %272 = arith.addf %242, %271 : vector<32x128xf32>
    %cst_154 = arith.constant 0.000000e+00 : f32
    %273 = vector.broadcast %cst_154 : f32 to vector<32x128xf32>
    %274 = arith.maximumf %272, %273 : vector<32x128xf32>
    %c0_155 = arith.constant 0 : index
    %c0_156 = arith.constant 0 : index
    %275 = vector.load %arg16[%c0_155, %c0_156] : memref<32x128xf32, #tpu.memory_space<vmem>>, vector<32x128xf32>
    tpu.vector_store %arg16[%c0_155, %c0_156], %274 {strides = array<i32>} : memref<32x128xf32, #tpu.memory_space<vmem>>, vector<32x128xf32>,
    return
  }
  func.func @transform_0(%arg0: i32) -> (i32, i32) {
    %c0_i32 = arith.constant 0 : i32
    %c0_i32_0 = arith.constant 0 : i32
    %c0_i32_1 = arith.constant 0 : i32
    return %c0_i32, %c0_i32_0 : i32, i32
  }
  func.func @transform_1(%arg0: i32) -> (i32, i32, i32) {
    %c0_i32 = arith.constant 0 : i32
    %c0_i32_0 = arith.constant 0 : i32
    %c0_i32_1 = arith.constant 0 : i32
    %c0_i32_2 = arith.constant 0 : i32
    return %c0_i32, %c0_i32_0, %c0_i32_1 : i32, i32, i32
  }
  func.func @transform_2(%arg0: i32) -> (i32, i32, i32) {
    %c0_i32 = arith.constant 0 : i32
    %c0_i32_0 = arith.constant 0 : i32
    %c0_i32_1 = arith.constant 0 : i32
    %c0_i32_2 = arith.constant 0 : i32
    return %c0_i32, %c0_i32_0, %c0_i32_1 : i32, i32, i32
  }
  func.func @transform_3(%arg0: i32) -> (i32, i32) {
    %c0_i32 = arith.constant 0 : i32
    %c0_i32_0 = arith.constant 0 : i32
    %c0_i32_1 = arith.constant 0 : i32
    return %c0_i32, %c0_i32_0 : i32, i32
  }
  func.func @transform_4(%arg0: i32) -> (i32, i32) {
    %c0_i32 = arith.constant 0 : i32
    %c0_i32_0 = arith.constant 0 : i32
    %c0_i32_1 = arith.constant 0 : i32
    return %c0_i32, %c0_i32_0 : i32, i32
  }
  func.func @transform_5(%arg0: i32) -> (i32, i32) {
    %c0_i32 = arith.constant 0 : i32
    %c0_i32_0 = arith.constant 0 : i32
    %c0_i32_1 = arith.constant 0 : i32
    return %c0_i32, %c0_i32_0 : i32, i32
  }
  func.func @transform_6(%arg0: i32) -> (i32, i32, i32) {
    %c0_i32 = arith.constant 0 : i32
    %c0_i32_0 = arith.constant 0 : i32
    %c0_i32_1 = arith.constant 0 : i32
    %c0_i32_2 = arith.constant 0 : i32
    return %c0_i32, %c0_i32_0, %c0_i32_1 : i32, i32, i32
  }
  func.func @transform_7(%arg0: i32) -> (i32, i32) {
    %c0_i32 = arith.constant 0 : i32
    %c0_i32_0 = arith.constant 0 : i32
    %c0_i32_1 = arith.constant 0 : i32
    return %c0_i32, %c0_i32_0 : i32, i32
  }
  func.func @transform_8(%arg0: i32) -> (i32, i32) {
    %c0_i32 = arith.constant 0 : i32
    %c0_i32_0 = arith.constant 0 : i32
    %c0_i32_1 = arith.constant 0 : i32
    return %c0_i32, %c0_i32_0 : i32, i32
  }
  func.func @transform_9(%arg0: i32) -> (i32, i32) {
    %c0_i32 = arith.constant 0 : i32
    %c0_i32_0 = arith.constant 0 : i32
    %c0_i32_1 = arith.constant 0 : i32
    return %c0_i32, %c0_i32_0 : i32, i32
  }
  func.func @transform_10(%arg0: i32) -> (i32, i32) {
    %c0_i32 = arith.constant 0 : i32
    %c0_i32_0 = arith.constant 0 : i32
    %c0_i32_1 = arith.constant 0 : i32
    return %c0_i32, %c0_i32_0 : i32, i32
  }
  func.func @transform_11(%arg0: i32) -> (i32, i32) {
    %c0_i32 = arith.constant 0 : i32
    %c0_i32_0 = arith.constant 0 : i32
    %c0_i32_1 = arith.constant 0 : i32
    return %c0_i32, %c0_i32_0 : i32, i32
  }
  func.func @transform_12(%arg0: i32) -> (i32, i32) {
    %c0_i32 = arith.constant 0 : i32
    %c0_i32_0 = arith.constant 0 : i32
    %c0_i32_1 = arith.constant 0 : i32
    return %c0_i32, %c0_i32_0 : i32, i32
  }
  func.func @transform_13(%arg0: i32) -> (i32, i32) {
    %c0_i32 = arith.constant 0 : i32
    %c0_i32_0 = arith.constant 0 : i32
    %c0_i32_1 = arith.constant 0 : i32
    return %c0_i32, %c0_i32_0 : i32, i32
  }
  func.func @transform_14(%arg0: i32) -> (i32, i32) {
    %c0_i32 = arith.constant 0 : i32
    %c0_i32_0 = arith.constant 0 : i32
    %c0_i32_1 = arith.constant 0 : i32
    return %c0_i32, %c0_i32_0 : i32, i32
  }
  func.func @transform_15(%arg0: i32) -> (i32, i32) {
    %c0_i32 = arith.constant 0 : i32
    %c0_i32_0 = arith.constant 0 : i32
    %c0_i32_1 = arith.constant 0 : i32
    return %c0_i32, %c0_i32_0 : i32, i32
  }
}

</mosaic_0001>

<bundles_post_ra>
// kernel: tpu_custom_call.1
= control target key start
LH: loop header
LB: loop body
LE: loop exit
PB: predicated region body
PF: predicated region fallthrough
CT: control target
= control target key end

     0   :  { %20 = vsyncpa [#allocation3], 0  ;;  %s4584_s0 = inlined_call_operand.vmem [shape: f32[128,128], index: 0, kind: input, shape index: {}]   ;;  %s4585_s1 = inlined_call_operand.vmem [shape: bf16[9,32,128], index: 1, kind: input, shape index: {}]   ;;  %s4586_s2 = inlined_call_operand.vmem [shape: f32[9,32,1], index: 2, kind: input, shape index: {}]   ;;  %s4587_s3 = inlined_call_operand.hbm [shape: bf16[128,128], index: 3, kind: input, shape index: {}]   ;;  %s4588_s4 = inlined_call_operand.vmem [shape: f32[1,128], index: 4, kind: input, shape index: {}]   ;;  %s4589_s5 = inlined_call_operand.vmem [shape: f32[1,128], index: 5, kind: input, shape index: {}]   ;;  %s4590_s6 = inlined_call_operand.hbm [shape: bf16[9,128,128], index: 6, kind: input, shape index: {}]   ;;  %s4591_s7 = inlined_call_operand.vmem [shape: f32[1,128], index: 7, kind: input, shape index: {}]   ;;  %s4592_s8 = inlined_call_operand.vmem [shape: f32[1,128], index: 8, kind: input, shape index: {}]   ;;  %s4593_s9 = inlined_call_operand.hbm [shape: bf16[128,128], index: 9, kind: input, shape index: {}]   ;;  %s4594_s10 = inlined_call_operand.vmem [shape: f32[1,128], index: 10, kind: input, shape index: {}]   ;;  %s4595_s11 = inlined_call_operand.vmem [shape: f32[1,128], index: 11, kind: input, shape index: {}]   ;;  %s4596_s12 = inlined_call_operand.hbm [shape: bf16[128,128], index: 12, kind: input, shape index: {}]   ;;  %s4597_s13 = inlined_call_operand.vmem [shape: f32[1,128], index: 13, kind: input, shape index: {}]   ;;  %s4598_s14 = inlined_call_operand.vmem [shape: f32[1,128], index: 14, kind: input, shape index: {}]   ;;  %s4599_s15 = inlined_call_operand.hbm [shape: f32[32,128], index: 15, kind: output, shape index: {}]  }
   0x1   :  { %21 = vsyncpa [#allocation6], 0 }
   0x2   :  { %22 = vsyncpa [#allocation9], 0 }
   0x3   :  { %23 = vsyncpa [#allocation4], 0  ;;  %s3907_s18 = smov [#allocation5]   ;;  %s3908_s20 = smov [#allocation2]  }
   0x4   :  { %s51_s19 = sshll.u32 %s3907_s18, 4  ;;  %s35_s21 = sshll.u32 %s3908_s20, 4  ;;  %s52_s19 = int_to_ptr.vmem [resolvable:$true] %s51_s19  ;;  %s36_s21 = int_to_ptr.vmem [resolvable:$true] %s35_s21 }
   0x5   :  { %s3807_s22 = scalar_lea.vmem %s52_s19, 9216  ;;  %p3812_p1 = scmp.lt.s32.totalorder %s52_s19, %s52_s19 }
   0x6   :  { %p3808_p0 = scmp.ne.s32.totalorder %s52_s19, %s3807_s22  ;;  %p3813_p2 = scmp.lt.s32.totalorder %s3807_s22, %s3807_s22 }
   0x8   :  { %p3814_p3 = por %p3813_p2, %p3812_p1 }
   0xa   :  { %p3815_p4 = pnand %p3814_p3, %p3808_p0 }
   0xc   :  { %3818 = shalt.err (!%p3815_p4)
}
   0xd   :  { %s3909_s23 = smov 64   ;;  %s3910_s24 = smov 4  }
   0xe   :  { %57 = dma.hbm_to_vmem [thread:$0]  %s4590_s6, 9216, %s52_s19, [#allocation6], %s3909_s23, %s3909_s23, %s3910_s24  }
   0xf   :  { %s3827_s27 = scalar_lea.vmem %s36_s21, 1024  ;;  %p3832_p6 = scmp.lt.s32.totalorder %s36_s21, %s36_s21 }
  0x10   :  { %p3828_p5 = scmp.ne.s32.totalorder %s36_s21, %s3827_s27  ;;  %p3833_p7 = scmp.lt.s32.totalorder %s3827_s27, %s3827_s27 }
  0x12   :  { %p3834_p8 = por %p3833_p7, %p3832_p6 }
  0x14   :  { %p3835_p9 = pnand %p3834_p8, %p3828_p5 }
  0x16   :  { %3838 = shalt.err (!%p3835_p9)
}
  0x17   :  { %41 = dma.hbm_to_vmem [thread:$0]  %s4587_s3, 1024, %s36_s21, [#allocation3], %s3909_s23, %s3909_s23, %s3910_s24  }
  0x18   :  { %s3911_s30 = smov [#allocation7]   ;;  %s3912_s17 = smov [#allocation8]  }
  0x19   :  { %s67_s16 = sshll.u32 %s3911_s30, 4  ;;  %s83_s18 = sshll.u32 %s3912_s17, 4  ;;  %s68_s16 = int_to_ptr.vmem [resolvable:$true] %s67_s16  ;;  %s84_s18 = int_to_ptr.vmem [resolvable:$true] %s83_s18 }
  0x1a   :  { %s3847_s6 = scalar_lea.vmem %s68_s16, 1024  ;;  %p3852_p11 = scmp.lt.s32.totalorder %s68_s16, %s68_s16 }
  0x1b   :  { %p3848_p10 = scmp.ne.s32.totalorder %s68_s16, %s3847_s6  ;;  %p3853_p12 = scmp.lt.s32.totalorder %s3847_s6, %s3847_s6 }
  0x1d   :  { %p3854_p13 = por %p3853_p12, %p3852_p11 }
  0x1f   :  { %p3855_p0 = pnand %p3854_p13, %p3848_p10 }
  0x21   :  { %3858 = shalt.err (!%p3855_p0)
}
  0x22   :  { %73 = dma.hbm_to_vmem [thread:$0]  %s4593_s9, 1024, %s68_s16, [#allocation6], %s3909_s23, %s3909_s23, %s3910_s24  }
  0x23   :  { %s3867_s3 = scalar_lea.vmem %s84_s18, 1024  ;;  %p3872_p2 = scmp.lt.s32.totalorder %s84_s18, %s84_s18 }
  0x24   :  { %p3868_p1 = scmp.ne.s32.totalorder %s84_s18, %s3867_s3  ;;  %p3873_p3 = scmp.lt.s32.totalorder %s3867_s3, %s3867_s3 }
  0x26   :  { %p3874_p4 = por %p3873_p3, %p3872_p2 }
  0x28   :  { %p3875_p5 = pnand %p3874_p4, %p3868_p1 }
  0x2a   :  { %3878 = shalt.err (!%p3875_p5)
}
  0x2b   :  { %89 = dma.hbm_to_vmem [thread:$0]  %s4596_s12, 1024, %s84_s18, [#allocation9], %s3909_s23, %s3909_s23, %s3910_s24  }
  0x2c   :  { %3899 = dma.done.wait [#allocation3], 1024  }
  0x2d   :  { %3900 = vsyncadd [#allocation3], 4294966272 }
  0x2e   :  { %3901 = dma.done.wait [#allocation6], 10240  }
  0x2f   :  { %3902 = vsyncadd [#allocation6], 4294957056 }
  0x30   :  { %3903 = dma.done.wait [#allocation9], 1024  }
  0x31   :  { %3904 = vsyncadd [#allocation9], 4294966272  ;;  %v3913_v0 = vmov 0   ;;  %v4021_v1 = vld [vmem:[#allocation2 + $0x38] sm:$0xff]   ;;  %v4023_v2 = vld [vmem:[#allocation2 + $0x30] sm:$0xff]  }
  0x32   :  { %3667 = vset.pattern.permute.xlu0 %v3913_v0  ;;  %3668 = vset.pattern.permute.xlu1 %v3913_v0  ;;  %v4030_v3 = vld [vmem:[#allocation2 + $0x28] sm:$0xff]   ;;  %v4036_v4 = vld [vmem:[#allocation2 + $0x20] sm:$0xff]   ;;  %v4047_v8 = vld [vmem:[#allocation2 + $0x18] sm:$0xff]  }
  0x33   :  { %3225 = vmatprep.subr.bf16.mxu0 %v4021_v1  ;;  %3257 = vmatprep.subr.bf16.mxu1 %v4021_v1  ;;  %v107_v5 = vld [vmem:[%s4584_s0] sm:$0xff]  ;;  %v108_v6 = vld [vmem:[%s4584_s0 + $0x8] sm:$0xff]  ;;  %v4052_v9 = vld [vmem:[#allocation2 + $0x10] sm:$0xff]  }
  0x34   :  { %3226 = vmatpush3.bf16.msra.mxu0 %v4021_v1  ;;  %3258 = vmatpush3.bf16.msra.mxu1 %v4021_v1  ;;  %v139_v7 = vpack.c.bf16 %v108_v6, %v107_v5  ;;  %v3679_v10 = vld [vmem:[%s4585_s1] sm:$0xff]   ;;  %v2849_v12 = vld [vmem:[%s4586_s2 + $0x30] sm:$0xff]  ;;  %v2848_v13 = vld [vmem:[%s4586_s2 + $0x28] sm:$0xff] }
  0x35   :  { %3227 = vmatprep.subr.bf16.mxu0 %v4023_v2  ;;  %3259 = vmatprep.subr.bf16.mxu1 %v4023_v2  ;;  %v2847_v11 = vld [vmem:[%s4586_s2 + $0x20] sm:$0xff]  ;;  %v4071_v14 = vld [vmem:[#allocation2 + $0x8] sm:$0xff]   ;;  %v2850_v15 = vld [vmem:[%s4586_s2 + $0x38] sm:$0xff] }
  0x36   :  { %3241 = vmatprep.mubr.bf16.mxu0 %v139_v7  ;;  %3273 = vmatprep.mubr.bf16.mxu1 %v3679_v10  ;;  %v451_v16 = vld [vmem:[%s4586_s2] sm:$0xff]  ;;  %v452_v18 = vld [vmem:[%s4586_s2 + $0x8] sm:$0xff]  ;;  %v109_v19 = vld [vmem:[%s4584_s0 + $0x10] sm:$0xff] }
  0x37   :  { %582 = vperm.xlu0 %3667, %v2847_v11   ;;  %592 = vperm.xlu1 %3668, %v2849_v12   ;;  %v4083_v17 = vld [vmem:[#allocation2] sm:$0xff]   ;;  %v110_v20 = vld [vmem:[%s4584_s0 + $0x18] sm:$0xff]  ;;  %v453_v21 = vld [vmem:[%s4586_s2 + $0x10] sm:$0xff] }
  0x38   :  { %3228 = vmatpush3.bf16.msra.mxu0 %v4023_v2  ;;  %3260 = vmatpush3.bf16.msra.mxu1 %v4023_v2  ;;  %v111_v22 = vld [vmem:[%s4584_s0 + $0x20] sm:$0xff]  ;;  %v112_v23 = vld [vmem:[%s4584_s0 + $0x28] sm:$0xff]  ;;  %v454_v24 = vld [vmem:[%s4586_s2 + $0x18] sm:$0xff]  ;;  %v140_v26 = vpack.c.bf16 %v110_v20, %v109_v19 }
  0x39   :  { %3229 = vmatprep.subr.bf16.mxu0 %v4030_v3  ;;  %3261 = vmatprep.subr.bf16.mxu1 %v4030_v3  ;;  %v2873_v25 = vld [vmem:[%s4586_s2 + $0x40] sm:$0xff]  ;;  %v3680_v27 = vld [vmem:[%s4585_s1 + $0x8] sm:$0xff]   ;;  %v141_v28 = vpack.c.bf16 %v112_v23, %v111_v22  ;;  %v113_v30 = vld [vmem:[%s4584_s0 + $0x30] sm:$0xff] }
  0x3a   :  { %v2874_v29 = vld [vmem:[%s4586_s2 + $0x48] sm:$0xff]  ;;  %v114_v31 = vld [vmem:[%s4584_s0 + $0x38] sm:$0xff]  ;;  %v2875_v32 = vld [vmem:[%s4586_s2 + $0x50] sm:$0xff] }
  0x3b   :  { %587 = vperm.xlu0 %3667, %v2848_v13   ;;  %597 = vperm.xlu1 %3668, %v2850_v15   ;;  %v115_v33 = vld [vmem:[%s4584_s0 + $0x40] sm:$0xff]  ;;  %v116_v34 = vld [vmem:[%s4584_s0 + $0x48] sm:$0xff]  ;;  %v2876_v35 = vld [vmem:[%s4586_s2 + $0x58] sm:$0xff]  ;;  %v142_v37 = vpack.c.bf16 %v114_v31, %v113_v30 }
  0x3c   :  { %3230 = vmatpush3.bf16.msra.mxu0 %v4030_v3  ;;  %3262 = vmatpush3.bf16.msra.mxu1 %v4030_v3  ;;  %v2891_v36 = vld [vmem:[%s4586_s2 + $0x60] sm:$0xff]  ;;  %v143_v38 = vpack.c.bf16 %v116_v34, %v115_v33  ;;  %v2892_v39 = vld [vmem:[%s4586_s2 + $0x68] sm:$0xff]  ;;  %v117_v40 = vld [vmem:[%s4584_s0 + $0x50] sm:$0xff] }
  0x3d   :  { %3231 = vmatprep.subr.bf16.mxu0 %v4036_v4  ;;  %3263 = vmatprep.subr.bf16.mxu1 %v4036_v4  ;;  %v118_v41 = vld [vmem:[%s4584_s0 + $0x58] sm:$0xff]  ;;  %v2893_v42 = vld [vmem:[%s4586_s2 + $0x70] sm:$0xff]  ;;  %v119_v43 = vld [vmem:[%s4584_s0 + $0x60] sm:$0xff] }
  0x3e   :  { %v120_v44 = vld [vmem:[%s4584_s0 + $0x68] sm:$0xff]  ;;  %v2894_v45 = vld [vmem:[%s4586_s2 + $0x78] sm:$0xff]  ;;  %v2909_v46 = vld [vmem:[%s4586_s2 + $0x80] sm:$0xff]  ;;  %v144_v47 = vpack.c.bf16 %v118_v41, %v117_v40 }
  0x3f   :  { %457 = vperm.xlu0 %3667, %v451_v16   ;;  %462 = vperm.xlu1 %3668, %v452_v18   ;;  %v145_v48 = vpack.c.bf16 %v120_v44, %v119_v43  ;;  %v2910_v49 = vld [vmem:[%s4586_s2 + $0x88] sm:$0xff]  ;;  %v121_v50 = vld [vmem:[%s4584_s0 + $0x70] sm:$0xff]  ;;  %v122_v51 = vld [vmem:[%s4584_s0 + $0x78] sm:$0xff] }
  0x40   :  { %3232 = vmatpush3.bf16.msra.mxu0 %v4036_v4  ;;  %3264 = vmatpush3.bf16.msra.mxu1 %v4036_v4  ;;  %v2911_v52 = vld [vmem:[%s4586_s2 + $0x90] sm:$0xff]  ;;  %v2912_v53 = vld [vmem:[%s4586_s2 + $0x98] sm:$0xff]  ;;  %v2927_v55 = vld [vmem:[%s4586_s2 + $0xa0] sm:$0xff]  ;;  %v146_v56 = vpack.c.bf16 %v122_v51, %v121_v50 }
  0x41   :  { %3233 = vmatprep.subr.bf16.mxu0 %v4047_v8  ;;  %3265 = vmatprep.subr.bf16.mxu1 %v4047_v8  ;;  %v3677_v54 = vld [vmem:[%s4585_s1 + $0x10] sm:$0xff]   ;;  %v2928_v57 = vld [vmem:[%s4586_s2 + $0xa8] sm:$0xff]  ;;  %v3678_v59 = vld [vmem:[%s4585_s1 + $0x18] sm:$0xff]  }
  0x42   :  { %v2929_v58 = vld [vmem:[%s4586_s2 + $0xb0] sm:$0xff]  ;;  %v2930_v60 = vld [vmem:[%s4586_s2 + $0xb8] sm:$0xff]  ;;  %v2945_v61 = vld [vmem:[%s4586_s2 + $0xc0] sm:$0xff] }
  0x43   :  { %467 = vperm.xlu0 %3667, %v453_v21   ;;  %472 = vperm.xlu1 %3668, %v454_v24   ;;  %v2946_v62 = vld [vmem:[%s4586_s2 + $0xc8] sm:$0xff]  ;;  %v2947_v63 = vld [vmem:[%s4586_s2 + $0xd0] sm:$0xff]  ;;  %v2948_v0 = vld [vmem:[%s4586_s2 + $0xd8] sm:$0xff] }
  0x44   :  { %3234 = vmatpush3.bf16.msra.mxu0 %v4047_v8  ;;  %3266 = vmatpush3.bf16.msra.mxu1 %v4047_v8  ;;  %v2966_v5 = vld [vmem:[%s4586_s2 + $0xf8] sm:$0xff]  ;;  %v2981_v6 = vld [vmem:[%s4586_s2 + $0x100] sm:$0xff]  ;;  %v2982_v7 = vld [vmem:[%s4586_s2 + $0x108] sm:$0xff] }
  0x45   :  { %3235 = vmatprep.subr.bf16.mxu0 %v4052_v9  ;;  %3267 = vmatprep.subr.bf16.mxu1 %v4052_v9  ;;  %v3681_v10 = vld [vmem:[#allocation5 + $0x78] sm:$0xff]   ;;  %v3683_v12 = vld [vmem:[#allocation5 + $0x70] sm:$0xff]   ;;  %v3686_v15 = vld [vmem:[#allocation5 + $0x28] sm:$0xff]  }
  0x46   :  { %v3682_v11 = vld [vmem:[#allocation5 + $0x38] sm:$0xff]   ;;  %v3684_v13 = vld [vmem:[#allocation5 + $0x30] sm:$0xff]   ;;  %v3687_v16 = vld [vmem:[#allocation5 + $0x60] sm:$0xff]  }
  0x47   :  { %902 = vperm.xlu0 %3667, %v2873_v25   ;;  %907 = vperm.xlu1 %3668, %v2874_v29   ;;  %v3689_v18 = vld [vmem:[#allocation5 + $0x58] sm:$0xff]   ;;  %v3691_v20 = vld [vmem:[#allocation5 + $0x50] sm:$0xff]   ;;  %v3693_v22 = vld [vmem:[#allocation5 + $0x48] sm:$0xff]  }
  0x48   :  { %3236 = vmatpush3.bf16.msra.mxu0 %v4052_v9  ;;  %3268 = vmatpush3.bf16.msra.mxu1 %v4052_v9  ;;  %v3690_v19 = vld [vmem:[#allocation5 + $0x18] sm:$0xff]   ;;  %v3692_v21 = vld [vmem:[#allocation5 + $0x10] sm:$0xff]   ;;  %v3694_v23 = vld [vmem:[#allocation5 + $0x8] sm:$0xff]  }
  0x49   :  { %3237 = vmatprep.subr.bf16.mxu0 %v4071_v14  ;;  %3269 = vmatprep.subr.bf16.mxu1 %v4071_v14  ;;  %v3695_v24 = vld [vmem:[#allocation5 + $0x40] sm:$0xff]  }
  0x4a   :  { %v3696_v25 = vld [vmem:[#allocation5] sm:$0xff]  }
  0x4b   :  { %912 = vperm.xlu0 %3667, %v2875_v32   ;;  %917 = vperm.xlu1 %3668, %v2876_v35  }
  0x4c   :  { %3238 = vmatpush3.bf16.msra.mxu0 %v4071_v14  ;;  %3270 = vmatpush3.bf16.msra.mxu1 %v4071_v14 }
  0x4d   :  { %3239 = vmatprep.subr.bf16.mxu0 %v4083_v17  ;;  %3271 = vmatprep.subr.bf16.mxu1 %v4083_v17 }
  0x4f   :  { %1129 = vperm.xlu0 %3667, %v2891_v36   ;;  %1134 = vperm.xlu1 %3668, %v2892_v39  }
  0x50   :  { %3240 = vmatpush3.bf16.msra.mxu0 %v4083_v17  ;;  %3272 = vmatpush3.bf16.msra.mxu1 %v4083_v17 }
  0x51   :  { %3277 = vmatprep.subr.bf16.mxu0 %v4021_v1  ;;  %3297 = vmatprep.subr.bf16.mxu1 %v3681_v10 }
  0x53   :  { %3242 = vmatmul.mubr.bf16.vlgmr.msra.gmra.mxu0 %v140_v26  ;;  %3274 = vmatmul.mubr.bf16.vlgmr.msra.gmra.mxu1 %v3680_v27 }
  0x54   :  { %3245 = vmatprep.mubr.bf16.mxu0 %v141_v28  ;;  %3278 = vmatpush3.bf16.msra.mxu0 %v4021_v1 }
  0x55   :  { %3279 = vmatprep.subr.bf16.mxu0 %v4023_v2  ;;  %1139 = vperm.xlu0 %3667, %v2893_v42  }
  0x56   :  { %1144 = vperm.xlu1 %3668, %v2894_v45   ;;  %3298 = vmatpush3.bf16.msra.mxu1 %v3681_v10 }
  0x57   :  { %3299 = vmatprep.subr.bf16.mxu1 %v3683_v12 }
  0x58   :  { %3280 = vmatpush3.bf16.msra.mxu0 %v4023_v2  ;;  %v2963_v2 = vld [vmem:[%s4586_s2 + $0xe0] sm:$0xff] }
  0x59   :  { %3281 = vmatprep.subr.bf16.mxu0 %v4030_v3  ;;  %1356 = vperm.xlu0 %3667, %v2909_v46  }
  0x5a   :  { %1361 = vperm.xlu1 %3668, %v2910_v49   ;;  %3300 = vmatpush3.bf16.msra.mxu1 %v3683_v12 }
  0x5b   :  { %3246 = vmatmul.mubr.bf16.gmra.mxu0 %v142_v37 }
  0x5c   :  { %3249 = vmatprep.mubr.bf16.mxu0 %v143_v38  ;;  %3282 = vmatpush3.bf16.msra.mxu0 %v4030_v3  ;;  %v2964_v3 = vld [vmem:[%s4586_s2 + $0xe8] sm:$0xff] }
  0x5d   :  { %3283 = vmatprep.subr.bf16.mxu0 %v4036_v4  ;;  %1366 = vperm.xlu0 %3667, %v2911_v52  }
  0x5e   :  { %1371 = vperm.xlu1 %3668, %v2912_v53  }
  0x60   :  { %3284 = vmatpush3.bf16.msra.mxu0 %v4036_v4  ;;  %v2965_v4 = vld [vmem:[%s4586_s2 + $0xf0] sm:$0xff] }
  0x61   :  { %3285 = vmatprep.subr.bf16.mxu0 %v4047_v8  ;;  %1583 = vperm.xlu0 %3667, %v2927_v55  }
  0x62   :  { %1588 = vperm.xlu1 %3668, %v2928_v57  }
  0x63   :  { %3250 = vmatmul.mubr.bf16.gmra.mxu0 %v144_v47 }
  0x64   :  { %3253 = vmatprep.mubr.bf16.mxu0 %v145_v48  ;;  %3286 = vmatpush3.bf16.msra.mxu0 %v4047_v8  ;;  %v2983_v8 = vld [vmem:[%s4586_s2 + $0x110] sm:$0xff] }
  0x65   :  { %3287 = vmatprep.subr.bf16.mxu0 %v4052_v9  ;;  %1593 = vperm.xlu0 %3667, %v2929_v58  }
  0x66   :  { %1598 = vperm.xlu1 %3668, %v2930_v60  }
  0x68   :  { %3288 = vmatpush3.bf16.msra.mxu0 %v4052_v9  ;;  %v2984_v9 = vld [vmem:[%s4586_s2 + $0x118] sm:$0xff] }
  0x69   :  { %3289 = vmatprep.subr.bf16.mxu0 %v4071_v14  ;;  %1810 = vperm.xlu0 %3667, %v2945_v61  }
  0x6a   :  { %1815 = vperm.xlu1 %3668, %v2946_v62  }
  0x6b   :  { %3254 = vmatmul.mubr.bf16.gmra.mxu0 %v146_v56 }
  0x6c   :  { %3290 = vmatpush3.bf16.msra.mxu0 %v4071_v14  ;;  %3293 = vmatprep.mubr.bf16.mxu0 %v3677_v54  ;;  %v3685_v14 = vld [vmem:[#allocation5 + $0x68] sm:$0xff]  }
  0x6d   :  { %3291 = vmatprep.subr.bf16.mxu0 %v4083_v17  ;;  %1820 = vperm.xlu0 %3667, %v2947_v63  }
  0x6e   :  { %1825 = vperm.xlu1 %3668, %v2948_v0   ;;  %3301 = vmatprep.subr.bf16.mxu1 %v3685_v14 }
  0x6f   :  { %3302 = vmatpush3.bf16.msra.mxu1 %v3685_v14 }
  0x70   :  { %3292 = vmatpush3.bf16.msra.mxu0 %v4083_v17  ;;  %3303 = vmatprep.subr.bf16.mxu1 %v3687_v16  ;;  %v3688_v17 = vld [vmem:[#allocation5 + $0x20] sm:$0xff]  }
  0x71   :  { %2037 = vperm.xlu0 %3667, %v2963_v2   ;;  %3317 = vmatprep.subr.bf16.mxu0 %v3682_v11 }
  0x72   :  { %2042 = vperm.xlu1 %3668, %v2964_v3  }
  0x73   :  { %3294 = vmatmul.mubr.bf16.vlgmr.msra.gmra.mxu0 %v3678_v59  ;;  %3304 = vmatpush3.bf16.msra.mxu1 %v3687_v16 }
  0x74   :  { %3318 = vmatpush3.bf16.msra.mxu0 %v3682_v11  ;;  %3305 = vmatprep.subr.bf16.mxu1 %v3689_v18 }
  0x75   :  { %2047 = vperm.xlu0 %3667, %v2965_v4   ;;  %3319 = vmatprep.subr.bf16.mxu0 %v3684_v13 }
  0x76   :  { %2052 = vperm.xlu1 %3668, %v2966_v5  }
  0x77   :  { %3306 = vmatpush3.bf16.msra.mxu1 %v3689_v18 }
  0x78   :  { %3320 = vmatpush3.bf16.msra.mxu0 %v3684_v13  ;;  %3307 = vmatprep.subr.bf16.mxu1 %v3691_v20 }
  0x79   :  { %2264 = vperm.xlu0 %3667, %v2981_v6   ;;  %3321 = vmatprep.subr.bf16.mxu0 %v3686_v15 }
  0x7a   :  { %2269 = vperm.xlu1 %3668, %v2982_v7  }
  0x7b   :  { %3308 = vmatpush3.bf16.msra.mxu1 %v3691_v20 }
  0x7c   :  { %3322 = vmatpush3.bf16.msra.mxu0 %v3686_v15  ;;  %3309 = vmatprep.subr.bf16.mxu1 %v3693_v22 }
  0x7d   :  { %2274 = vperm.xlu0 %3667, %v2983_v8   ;;  %3323 = vmatprep.subr.bf16.mxu0 %v3688_v17 }
  0x7e   :  { %2279 = vperm.xlu1 %3668, %v2984_v9  }
  0x7f   :  { %3310 = vmatpush3.bf16.msra.mxu1 %v3693_v22 }
  0x80   :  { %3324 = vmatpush3.bf16.msra.mxu0 %v3688_v17  ;;  %3311 = vmatprep.subr.bf16.mxu1 %v3695_v24 }
  0x81   :  { %3325 = vmatprep.subr.bf16.mxu0 %v3690_v19 }
  0x83   :  { %3312 = vmatpush3.bf16.msra.mxu1 %v3695_v24 }
  0x84   :  { %3326 = vmatpush3.bf16.msra.mxu0 %v3690_v19  ;;  %3337 = vmatprep.subr.bf16.mxu1 %v4021_v1 }
  0x85   :  { %3327 = vmatprep.subr.bf16.mxu0 %v3692_v21 }
  0x88   :  { %3328 = vmatpush3.bf16.msra.mxu0 %v3692_v21 }
  0x89   :  { %3329 = vmatprep.subr.bf16.mxu0 %v3694_v23 }
  0x8c   :  { %3330 = vmatpush3.bf16.msra.mxu0 %v3694_v23 }
  0x8d   :  { %3331 = vmatprep.subr.bf16.mxu0 %v3696_v25 }
  0x90   :  { %3332 = vmatpush3.bf16.msra.mxu0 %v3696_v25 }
 0x113   :  { %v3243_v26 = vpop.f32.mrf.mxu0 }
 0x114   :  { %v317_v34 = vmul.f32 %v3243_v26, %v3243_v26 }
 0x115   :  { %v229_v27 = vpop.f32.mrf.mxu0 }
 0x116   :  { %v315_v30 = vmul.f32 %v229_v27, %v229_v27 }
 0x117   :  { %v3244_v28 = vpop.f32.mrf.mxu0 }
 0x118   :  { %v318_v38 = vmul.f32 %v3244_v28, %v3244_v28 }
 0x119   :  { %v232_v29 = vpop.f32.mrf.mxu0 }
 0x11a   :  { %v294_v31 = vadd.f32 %v232_v29, %v229_v27  ;;  %v316_v32 = vmul.f32 %v232_v29, %v232_v29 }
 0x11b   :  { %v3247_v33 = vpop.f32.mrf.mxu0 }
 0x11c   :  { %v295_v35 = vadd.f32 %v3243_v26, %v294_v31  ;;  %v331_v36 = vadd.f32 %v316_v32, %v315_v30  ;;  %v321_v49 = vmul.f32 %v3247_v33, %v3247_v33 }
 0x11d   :  { %v245_v37 = vpop.f32.mrf.mxu0 }
 0x11e   :  { %v332_v39 = vadd.f32 %v331_v36, %v317_v34  ;;  %v296_v40 = vadd.f32 %v3244_v28, %v295_v35  ;;  %v319_v43 = vmul.f32 %v245_v37, %v245_v37 }
 0x11f   :  { %v3248_v41 = vpop.f32.mrf.mxu0 }
 0x120   :  { %v297_v42 = vadd.f32 %v296_v40, %v245_v37  ;;  %v333_v44 = vadd.f32 %v332_v39, %v318_v38  ;;  %v322_v53 = vmul.f32 %v3248_v41, %v3248_v41 }
 0x121   :  { %v248_v1 = vpop.f32.mrf.mxu0 }
 0x122   :  { %v334_v45 = vadd.f32 %v333_v44, %v319_v43  ;;  %v298_v46 = vadd.f32 %v297_v42, %v248_v1  ;;  %v320_v47 = vmul.f32 %v248_v1, %v248_v1  ;;  %v428_v42 = vlaneseq  ;;  %v3275_v43 = vpop.f32.mrf.mxu1  ;;  %v583_v44 = vpop.permute.xlu0 %582 }
 0x123   :  { %v3251_v48 = vpop.f32.mrf.mxu0  ;;  %v593_v1 = vpop.permute.xlu1 %592 }
 0x124   :  { %v299_v50 = vadd.f32 %v3247_v33, %v298_v46  ;;  %v335_v51 = vadd.f32 %v334_v45, %v320_v47  ;;  %v325_v2 = vmul.f32 %v3251_v48, %v3251_v48  ;;  %v429_v45 = vshrl.u32 %v428_v42, 7  ;;  %v412_v47 = vpop.f32.mrf.mxu1  ;;  %v4287_v42 = vld [vmem:[#allocation2 + $0x38] sm:$0xff]  }
 0x125   :  { %v261_v52 = vpop.f32.mrf.mxu0 }
 0x126   :  { %v336_v54 = vadd.f32 %v335_v51, %v321_v49  ;;  %v300_v55 = vadd.f32 %v3248_v41, %v299_v50  ;;  %v323_v58 = vmul.f32 %v261_v52, %v261_v52  ;;  %v4257_v49 = vsub.s32 0, %v429_v45  ;;  %v4302_v45 = vld [vmem:[#allocation2 + $0x18] sm:$0xff]  }
 0x127   :  { %v3252_v56 = vpop.f32.mrf.mxu0 }
 0x128   :  { %v301_v57 = vadd.f32 %v300_v55, %v261_v52  ;;  %v337_v59 = vadd.f32 %v336_v54, %v322_v53  ;;  %v326_v6 = vmul.f32 %v3252_v56, %v3252_v56  ;;  %v588_v52 = vpop.permute.xlu0 %587  ;;  %v598_v53 = vpop.permute.xlu1 %597 }
 0x129   :  { %v264_v60 = vpop.f32.mrf.mxu0  ;;  %v3276_v55 = vpop.f32.mrf.mxu1 }
 0x12a   :  { %v338_v61 = vadd.f32 %v337_v59, %v323_v58  ;;  %v302_v62 = vadd.f32 %v301_v57, %v264_v60  ;;  %v324_v63 = vmul.f32 %v264_v60, %v264_v60 }
 0x12b   :  { %v3255_v0 = vpop.f32.mrf.mxu0 }
 0x12c   :  { %v303_v3 = vadd.f32 %v3251_v48, %v302_v62  ;;  %v339_v4 = vadd.f32 %v338_v61, %v324_v63  ;;  %v329_v17 = vmul.f32 %v3255_v0, %v3255_v0  ;;  %v292_v48 = vld [vmem:[%s4588_s4] sm:$0x1]  ;;  %v415_v61 = vpop.f32.mrf.mxu1  ;;  %v458_v62 = vpop.permute.xlu0 %457 }
 0x12d   :  { %v277_v5 = vpop.f32.mrf.mxu0 }
 0x12e   :  { %v340_v7 = vadd.f32 %v339_v4, %v325_v2  ;;  %v304_v8 = vadd.f32 %v3252_v56, %v303_v3  ;;  %v327_v11 = vmul.f32 %v277_v5, %v277_v5  ;;  %v293_v56 = vld [vmem:[%s4589_s5] sm:$0x1] }
 0x12f   :  { %v3256_v9 = vpop.f32.mrf.mxu0 }
 0x130   :  { %v305_v10 = vadd.f32 %v304_v8, %v277_v5  ;;  %v341_v12 = vadd.f32 %v340_v7, %v326_v6  ;;  %v330_v20 = vmul.f32 %v3256_v9, %v3256_v9 }
 0x131   :  { %v280_v13 = vpop.f32.mrf.mxu0 }
 0x132   :  { %v342_v14 = vadd.f32 %v341_v12, %v327_v11  ;;  %v306_v15 = vadd.f32 %v305_v10, %v280_v13  ;;  %v328_v16 = vmul.f32 %v280_v13, %v280_v13 }
 0x133   :  { %v3295_v46 = vpop.f32.mrf.mxu0 }
 0x134   :  { %v307_v18 = vadd.f32 %v3255_v0, %v306_v15  ;;  %v343_v19 = vadd.f32 %v342_v14, %v328_v16  ;;  %v463_v0 = vpop.permute.xlu1 %462 }
 0x135   :  { %v548_v50 = vpop.f32.mrf.mxu0 }
 0x136   :  { %v308_v21 = vadd.f32 %v3256_v9, %v307_v18  ;;  %v344_v22 = vadd.f32 %v343_v19, %v329_v17 }
 0x137   :  { %v3296_v59 = vpop.f32.mrf.mxu0 }
 0x138   :  { %v309_v23 = vrot.slane %v308_v21, 4  ;;  %v345_v24 = vadd.f32 %v344_v22, %v330_v20 }
 0x139   :  { %v551_v6 = vpop.f32.mrf.mxu0 }
 0x13a   :  { %v310_v25 = vadd.f32 %v309_v23, %v308_v21  ;;  %v346_v26 = vrot.slane %v345_v24, 4  ;;  %v468_v23 = vpop.permute.xlu0 %467 }
 0x13c   :  { %v311_v27 = vrot.slane %v310_v25, 2  ;;  %v347_v28 = vadd.f32 %v346_v26, %v345_v24 }
 0x13e   :  { %v312_v29 = vadd.f32 %v311_v27, %v310_v25  ;;  %v348_v30 = vrot.slane %v347_v28, 2 }
 0x140   :  { %v313_v31 = vrot.slane %v312_v29, 1  ;;  %v349_v32 = vadd.f32 %v348_v30, %v347_v28  ;;  %v473_v28 = vpop.permute.xlu1 %472 }
 0x142   :  { %v314_v33 = vadd.f32 %v313_v31, %v312_v29  ;;  %v350_v34 = vrot.slane %v349_v32, 1 }
 0x144   :  { %v351_v35 = vadd.f32 %v350_v34, %v349_v32  ;;  %v352_v36 = vmul.f32 0.0078125, %v314_v33 }
 0x146   :  { %v353_v37 = vmul.f32 0.0078125, %v351_v35  ;;  %v354_v38 = vmul.f32 %v352_v36, %v352_v36 }
 0x148   :  { %v355_v39 = vsub.f32 %v353_v37, %v354_v38 }
 0x14a   :  { %v356_v40 = vmax.f32 %v355_v39, 0.0 }
 0x14c   :  { %v357_v41 = vadd.f32 1e-05, %v356_v40 }
 0x14e   :  { %3783 = vrsqrt.f32 %v357_v41  ;;  %v3697_v41 = vld [vmem:[%s4585_s1 + $0x20] sm:$0xff]  }
 0x15b   :  { %v3784_v51 = vpop.eup %3783 }
 0x15c   :  { %v359_v54 = vmul.f32 %v3784_v51, %v292_v48  ;;  %v4314_v48 = vld [vmem:[#allocation2] sm:$0xff]   ;;  %v3699_v51 = vld [vmem:[%s4585_s1 + $0x30] sm:$0xff]  }
 0x15e   :  { %v360_v57 = vmul.f32 %v359_v54, %v352_v36  ;;  %v4263_v58 = vrot.slane %v359_v54, %v4257_v49  ;;  %v3709_v54 = vld [vmem:[#allocation5 + $0xb8] sm:$0xff]  }
 0x15f   :  { %3357 = vmatprep.subr.bf16.mxu0 %v3709_v54 }
 0x160   :  { %v361_v60 = vsub.f32 %v293_v56, %v360_v57  ;;  %v565_v63 = vmul.f32 %v3295_v46, %v4263_v58  ;;  %v563_v3 = vmul.f32 %v548_v50, %v4263_v58  ;;  %v435_v4 = vmul.f32 %v3275_v43, %v4263_v58  ;;  %v4290_v43 = vld [vmem:[#allocation2 + $0x30] sm:$0xff]   ;;  %v3698_v50 = vld [vmem:[%s4585_s1 + $0x28] sm:$0xff]  }
 0x161   :  { %v566_v5 = vmul.f32 %v3296_v59, %v4263_v58  ;;  %v433_v7 = vmul.f32 %v4263_v58, %v412_v47  ;;  %v564_v8 = vmul.f32 %v551_v6, %v4263_v58  ;;  %v436_v9 = vmul.f32 %v3276_v55, %v4263_v58  ;;  %v4306_v46 = vld [vmem:[#allocation2 + $0x10] sm:$0xff]   ;;  %v4310_v47 = vld [vmem:[#allocation2 + $0x8] sm:$0xff]   ;;  %v3712_v59 = vld [vmem:[#allocation5 + $0xa0] sm:$0xff]  }
 0x162   :  { %v4267_v2 = vrot.slane %v361_v60, %v4257_v49  ;;  %v434_v10 = vmul.f32 %v4263_v58, %v415_v61  ;;  %v3710_v55 = vld [vmem:[#allocation5 + $0xb0] sm:$0xff]   ;;  %v3711_v56 = vld [vmem:[#allocation5 + $0xa8] sm:$0xff]   ;;  %v3715_v61 = vld [vmem:[#allocation5 + $0x98] sm:$0xff]  }
 0x163   :  { %v4367_v57 = vld [vmem:[%s4585_s1 + $0x48] sm:$0xff]   ;;  %v3703_v60 = vld [vmem:[%s4585_s1 + $0x50] sm:$0xff]  }
 0x164   :  { %v569_v11 = vadd.f32 %v565_v63, %v4267_v2  ;;  %v567_v12 = vadd.f32 %v563_v3, %v4267_v2  ;;  %v445_v13 = vadd.f32 %v4267_v2, %v435_v4  ;;  %v570_v14 = vadd.f32 %v566_v5, %v4267_v2  ;;  %v3717_v63 = vld [vmem:[#allocation5 + $0x88] sm:$0xff]   ;;  %v4383_v3 = vld [vmem:[#allocation5 + $0xf8] sm:$0xff]   ;;  %v3705_v5 = vld [vmem:[%s4585_s1 + $0x60] sm:$0xff]  }
 0x165   :  { %v443_v15 = vadd.f32 %v4267_v2, %v433_v7  ;;  %v568_v16 = vadd.f32 %v564_v8, %v4267_v2  ;;  %v446_v17 = vadd.f32 %v4267_v2, %v436_v9  ;;  %v444_v18 = vadd.f32 %v4267_v2, %v434_v10  ;;  %v3704_v4 = vld [vmem:[%s4585_s1 + $0x58] sm:$0xff]   ;;  %v3706_v6 = vld [vmem:[%s4585_s1 + $0x68] sm:$0xff]   ;;  %v3707_v7 = vld [vmem:[%s4585_s1 + $0x70] sm:$0xff]  }
 0x166   :  { %v573_v19 = vmax.f32 %v569_v11, 0.0  ;;  %v571_v20 = vmax.f32 %v567_v12, 0.0  ;;  %v449_v21 = vmax.f32 %v445_v13, 0.0  ;;  %v574_v22 = vmax.f32 %v570_v14, 0.0  ;;  %v3708_v8 = vld [vmem:[%s4585_s1 + $0x78] sm:$0xff]   ;;  %v3713_v9 = vld [vmem:[%s4585_s1 + $0x80] sm:$0xff]  }
 0x167   :  { %v447_v24 = vmax.f32 %v443_v15, 0.0  ;;  %v572_v25 = vmax.f32 %v568_v16, 0.0  ;;  %v450_v26 = vmax.f32 %v446_v17, 0.0  ;;  %v448_v27 = vmax.f32 %v444_v18, 0.0  ;;  %v3714_v13 = vld [vmem:[%s4585_s1 + $0x88] sm:$0xff]  }
 0x168   :  { %v602_v29 = vmul.f32 %v593_v1, %v573_v19  ;;  %v600_v30 = vmul.f32 %v583_v44, %v571_v20  ;;  %v477_v31 = vmul.f32 %v468_v23, %v449_v21  ;;  %v603_v32 = vmul.f32 %v598_v53, %v574_v22  ;;  %v4294_v44 = vld [vmem:[#allocation2 + $0x28] sm:$0xff]   ;;  %v4298_v1 = vld [vmem:[#allocation2 + $0x20] sm:$0xff]   ;;  %v908_v20 = vpop.permute.xlu1 %907 }
 0x169   :  { %v475_v33 = vmul.f32 %v458_v62, %v447_v24  ;;  %v601_v34 = vmul.f32 %v588_v52, %v572_v25  ;;  %v478_v35 = vmul.f32 %v473_v28, %v450_v26  ;;  %v476_v36 = vmul.f32 %v463_v0, %v448_v27  ;;  %v3700_v52 = vld [vmem:[%s4585_s1 + $0x38] sm:$0xff]   ;;  %v4346_v53 = vld [vmem:[%s4585_s1 + $0x40] sm:$0xff]   ;;  %v3716_v62 = vld [vmem:[#allocation5 + $0x90] sm:$0xff]   ;;  %v903_v25 = vpop.permute.xlu0 %902 }
 0x16a   :  { %v605_v37 = vpack.c.bf16 %v603_v32, %v602_v29  ;;  %v3718_v0 = vld [vmem:[#allocation5 + $0x80] sm:$0xff]  }
 0x16b   :  { %v480_v38 = vpack.c.bf16 %v478_v35, %v477_v31  ;;  %v604_v39 = vpack.c.bf16 %v601_v34, %v600_v30  ;;  %v479_v40 = vpack.c.bf16 %v476_v36, %v475_v33 }
 0x16c   :  { %v918_v32 = vpop.permute.xlu1 %917 }
 0x16d   :  { %3313 = vmatprep.mubr.bf16.mxu1 %v604_v39  ;;  %3333 = vmatprep.mubr.bf16.mxu0 %v479_v40  ;;  %v913_v35 = vpop.permute.xlu0 %912 }
 0x16e   :  { %3314 = vmatmul.mubr.bf16.vlgmr.msra.gmra.mxu1 %v605_v37  ;;  %3334 = vmatmul.mubr.bf16.vlgmr.msra.gmra.mxu0 %v480_v38 }
 0x16f   :  { %3338 = vmatpush3.bf16.msra.mxu1 %v4287_v42  ;;  %3353 = vmatprep.mubr.bf16.mxu1 %v3697_v41  ;;  %v3720_v41 = vld [vmem:[#allocation5 + $0xf0] sm:$0xff]  }
 0x170   :  { %3339 = vmatprep.subr.bf16.mxu1 %v4290_v43  ;;  %3358 = vmatpush3.bf16.msra.mxu0 %v3709_v54 }
 0x171   :  { %3359 = vmatprep.subr.bf16.mxu0 %v3710_v55 }
 0x173   :  { %3340 = vmatpush3.bf16.msra.mxu1 %v4290_v43 }
 0x174   :  { %3341 = vmatprep.subr.bf16.mxu1 %v4294_v44  ;;  %3360 = vmatpush3.bf16.msra.mxu0 %v3710_v55 }
 0x175   :  { %3361 = vmatprep.subr.bf16.mxu0 %v3711_v56 }
 0x177   :  { %3342 = vmatpush3.bf16.msra.mxu1 %v4294_v44 }
 0x178   :  { %3343 = vmatprep.subr.bf16.mxu1 %v4298_v1  ;;  %3362 = vmatpush3.bf16.msra.mxu0 %v3711_v56 }
 0x179   :  { %3363 = vmatprep.subr.bf16.mxu0 %v3712_v59 }
 0x17b   :  { %3344 = vmatpush3.bf16.msra.mxu1 %v4298_v1 }
 0x17c   :  { %3345 = vmatprep.subr.bf16.mxu1 %v4302_v45  ;;  %3364 = vmatpush3.bf16.msra.mxu0 %v3712_v59 }
 0x17d   :  { %3365 = vmatprep.subr.bf16.mxu0 %v3715_v61 }
 0x17f   :  { %3346 = vmatpush3.bf16.msra.mxu1 %v4302_v45 }
 0x180   :  { %3347 = vmatprep.subr.bf16.mxu1 %v4306_v46  ;;  %3366 = vmatpush3.bf16.msra.mxu0 %v3715_v61 }
 0x181   :  { %3367 = vmatprep.subr.bf16.mxu0 %v3716_v62 }
 0x183   :  { %3348 = vmatpush3.bf16.msra.mxu1 %v4306_v46 }
 0x184   :  { %3349 = vmatprep.subr.bf16.mxu1 %v4310_v47  ;;  %3368 = vmatpush3.bf16.msra.mxu0 %v3716_v62 }
 0x185   :  { %3369 = vmatprep.subr.bf16.mxu0 %v3717_v63 }
 0x187   :  { %3350 = vmatpush3.bf16.msra.mxu1 %v4310_v47 }
 0x188   :  { %3351 = vmatprep.subr.bf16.mxu1 %v4314_v48  ;;  %3370 = vmatpush3.bf16.msra.mxu0 %v3717_v63  ;;  %v3726_v63 = vld [vmem:[#allocation5 + $0xc0] sm:$0xff]  }
 0x189   :  { %3371 = vmatprep.subr.bf16.mxu0 %v3718_v0 }
 0x18b   :  { %3352 = vmatpush3.bf16.msra.mxu1 %v4314_v48 }
 0x18c   :  { %3377 = vmatprep.subr.bf16.mxu1 %v4287_v42  ;;  %3372 = vmatpush3.bf16.msra.mxu0 %v3718_v0 }
 0x18d   :  { %3397 = vmatprep.subr.bf16.mxu0 %v4383_v3 }
 0x18e   :  { %3354 = vmatmul.mubr.bf16.vlgmr.msra.gmra.mxu1 %v3698_v50 }
 0x18f   :  { %3378 = vmatpush3.bf16.msra.mxu1 %v4287_v42  ;;  %3393 = vmatprep.mubr.bf16.mxu1 %v3699_v51  ;;  %v3725_v51 = vld [vmem:[#allocation5 + $0xc8] sm:$0xff]  }
 0x190   :  { %3379 = vmatprep.subr.bf16.mxu1 %v4290_v43 }
 0x193   :  { %3380 = vmatpush3.bf16.msra.mxu1 %v4290_v43 }
 0x194   :  { %3381 = vmatprep.subr.bf16.mxu1 %v4294_v44 }
 0x197   :  { %3382 = vmatpush3.bf16.msra.mxu1 %v4294_v44 }
 0x198   :  { %3383 = vmatprep.subr.bf16.mxu1 %v4298_v1 }
 0x19b   :  { %3384 = vmatpush3.bf16.msra.mxu1 %v4298_v1 }
 0x19c   :  { %3385 = vmatprep.subr.bf16.mxu1 %v4302_v45 }
 0x19f   :  { %3386 = vmatpush3.bf16.msra.mxu1 %v4302_v45 }
 0x1a0   :  { %3387 = vmatprep.subr.bf16.mxu1 %v4306_v46 }
 0x1a3   :  { %3388 = vmatpush3.bf16.msra.mxu1 %v4306_v46 }
 0x1a4   :  { %3389 = vmatprep.subr.bf16.mxu1 %v4310_v47 }
 0x1a7   :  { %3390 = vmatpush3.bf16.msra.mxu1 %v4310_v47 }
 0x1a8   :  { %3391 = vmatprep.subr.bf16.mxu1 %v4314_v48 }
 0x1ab   :  { %3392 = vmatpush3.bf16.msra.mxu1 %v4314_v48 }
 0x1ac   :  { %3417 = vmatprep.subr.bf16.mxu1 %v4287_v42 }
 0x1ae   :  { %3394 = vmatmul.mubr.bf16.vlgmr.msra.gmra.mxu1 %v3700_v52  ;;  %v1135_v52 = vpop.permute.xlu1 %1134 }
 0x1af   :  { %3418 = vmatpush3.bf16.msra.mxu1 %v4287_v42  ;;  %3433 = vmatprep.mubr.bf16.mxu1 %v4346_v53 }
 0x1b0   :  { %3419 = vmatprep.subr.bf16.mxu1 %v4290_v43 }
 0x1b3   :  { %3420 = vmatpush3.bf16.msra.mxu1 %v4290_v43 }
 0x1b4   :  { %3421 = vmatprep.subr.bf16.mxu1 %v4294_v44 }
 0x1b7   :  { %3422 = vmatpush3.bf16.msra.mxu1 %v4294_v44 }
 0x1b8   :  { %3423 = vmatprep.subr.bf16.mxu1 %v4298_v1 }
 0x1bb   :  { %3424 = vmatpush3.bf16.msra.mxu1 %v4298_v1 }
 0x1bc   :  { %3425 = vmatprep.subr.bf16.mxu1 %v4302_v45 }
 0x1bf   :  { %3426 = vmatpush3.bf16.msra.mxu1 %v4302_v45 }
 0x1c0   :  { %3427 = vmatprep.subr.bf16.mxu1 %v4306_v46 }
 0x1c3   :  { %3428 = vmatpush3.bf16.msra.mxu1 %v4306_v46 }
 0x1c4   :  { %3429 = vmatprep.subr.bf16.mxu1 %v4310_v47 }
 0x1c7   :  { %3430 = vmatpush3.bf16.msra.mxu1 %v4310_v47 }
 0x1c8   :  { %3431 = vmatprep.subr.bf16.mxu1 %v4314_v48 }
 0x1cb   :  { %3432 = vmatpush3.bf16.msra.mxu1 %v4314_v48 }
 0x1cc   :  { %3457 = vmatprep.subr.bf16.mxu1 %v4287_v42 }
 0x1ce   :  { %3434 = vmatmul.mubr.bf16.vlgmr.msra.gmra.mxu1 %v4367_v57 }
 0x1cf   :  { %3458 = vmatpush3.bf16.msra.mxu1 %v4287_v42  ;;  %3473 = vmatprep.mubr.bf16.mxu1 %v3703_v60  ;;  %v1130_v60 = vpop.permute.xlu0 %1129 }
 0x1d0   :  { %3459 = vmatprep.subr.bf16.mxu1 %v4290_v43 }
 0x1d3   :  { %3460 = vmatpush3.bf16.msra.mxu1 %v4290_v43 }
 0x1d4   :  { %3461 = vmatprep.subr.bf16.mxu1 %v4294_v44 }
 0x1d7   :  { %3462 = vmatpush3.bf16.msra.mxu1 %v4294_v44 }
 0x1d8   :  { %3463 = vmatprep.subr.bf16.mxu1 %v4298_v1 }
 0x1db   :  { %3464 = vmatpush3.bf16.msra.mxu1 %v4298_v1 }
 0x1dc   :  { %3465 = vmatprep.subr.bf16.mxu1 %v4302_v45 }
 0x1df   :  { %3466 = vmatpush3.bf16.msra.mxu1 %v4302_v45 }
 0x1e0   :  { %3467 = vmatprep.subr.bf16.mxu1 %v4306_v46 }
 0x1e3   :  { %3468 = vmatpush3.bf16.msra.mxu1 %v4306_v46 }
 0x1e4   :  { %3469 = vmatprep.subr.bf16.mxu1 %v4310_v47 }
 0x1e7   :  { %3470 = vmatpush3.bf16.msra.mxu1 %v4310_v47 }
 0x1e8   :  { %3471 = vmatprep.subr.bf16.mxu1 %v4314_v48 }
 0x1eb   :  { %3472 = vmatpush3.bf16.msra.mxu1 %v4314_v48 }
 0x1ec   :  { %3497 = vmatprep.subr.bf16.mxu1 %v4287_v42 }
 0x1ee   :  { %3474 = vmatmul.mubr.bf16.vlgmr.msra.gmra.mxu1 %v3704_v4 }
 0x1ef   :  { %3498 = vmatpush3.bf16.msra.mxu1 %v4287_v42  ;;  %3513 = vmatprep.mubr.bf16.mxu1 %v3705_v5 }
 0x1f0   :  { %3499 = vmatprep.subr.bf16.mxu1 %v4290_v43 }
 0x1f3   :  { %3500 = vmatpush3.bf16.msra.mxu1 %v4290_v43 }
 0x1f4   :  { %3501 = vmatprep.subr.bf16.mxu1 %v4294_v44 }
 0x1f7   :  { %3502 = vmatpush3.bf16.msra.mxu1 %v4294_v44 }
 0x1f8   :  { %3503 = vmatprep.subr.bf16.mxu1 %v4298_v1 }
 0x1fb   :  { %3504 = vmatpush3.bf16.msra.mxu1 %v4298_v1 }
 0x1fc   :  { %3505 = vmatprep.subr.bf16.mxu1 %v4302_v45 }
 0x1ff   :  { %3506 = vmatpush3.bf16.msra.mxu1 %v4302_v45 }
 0x200   :  { %3507 = vmatprep.subr.bf16.mxu1 %v4306_v46 }
 0x203   :  { %3508 = vmatpush3.bf16.msra.mxu1 %v4306_v46 }
 0x204   :  { %3509 = vmatprep.subr.bf16.mxu1 %v4310_v47 }
 0x207   :  { %3510 = vmatpush3.bf16.msra.mxu1 %v4310_v47 }
 0x208   :  { %3511 = vmatprep.subr.bf16.mxu1 %v4314_v48 }
 0x20b   :  { %3512 = vmatpush3.bf16.msra.mxu1 %v4314_v48 }
 0x20c   :  { %3537 = vmatprep.subr.bf16.mxu1 %v4287_v42 }
 0x20e   :  { %3514 = vmatmul.mubr.bf16.vlgmr.msra.gmra.mxu1 %v3706_v6  ;;  %v1145_v6 = vpop.permute.xlu1 %1144 }
 0x20f   :  { %3538 = vmatpush3.bf16.msra.mxu1 %v4287_v42  ;;  %3553 = vmatprep.mubr.bf16.mxu1 %v3707_v7 }
 0x210   :  { %3539 = vmatprep.subr.bf16.mxu1 %v4290_v43 }
 0x213   :  { %3540 = vmatpush3.bf16.msra.mxu1 %v4290_v43 }
 0x214   :  { %3541 = vmatprep.subr.bf16.mxu1 %v4294_v44 }
 0x217   :  { %3542 = vmatpush3.bf16.msra.mxu1 %v4294_v44 }
 0x218   :  { %3543 = vmatprep.subr.bf16.mxu1 %v4298_v1 }
 0x21b   :  { %3544 = vmatpush3.bf16.msra.mxu1 %v4298_v1 }
 0x21c   :  { %3545 = vmatprep.subr.bf16.mxu1 %v4302_v45 }
 0x21f   :  { %3546 = vmatpush3.bf16.msra.mxu1 %v4302_v45 }
 0x220   :  { %3547 = vmatprep.subr.bf16.mxu1 %v4306_v46 }
 0x223   :  { %3548 = vmatpush3.bf16.msra.mxu1 %v4306_v46 }
 0x224   :  { %3549 = vmatprep.subr.bf16.mxu1 %v4310_v47 }
 0x227   :  { %3550 = vmatpush3.bf16.msra.mxu1 %v4310_v47 }
 0x228   :  { %3551 = vmatprep.subr.bf16.mxu1 %v4314_v48 }
 0x22b   :  { %3552 = vmatpush3.bf16.msra.mxu1 %v4314_v48 }
 0x22c   :  { %3577 = vmatprep.subr.bf16.mxu1 %v4287_v42 }
 0x22e   :  { %3554 = vmatmul.mubr.bf16.vlgmr.msra.gmra.mxu1 %v3708_v8  ;;  %v4453_v10 = vpop.f32.mrf.mxu1 }
 0x22f   :  { %3578 = vmatpush3.bf16.msra.mxu1 %v4287_v42  ;;  %3593 = vmatprep.mubr.bf16.mxu1 %v3713_v9  ;;  %v3721_v42 = vld [vmem:[#allocation5 + $0xe8] sm:$0xff]   ;;  %v3727_v9 = vld [vmem:[#allocation5 + $0x138] sm:$0xff]  }
 0x230   :  { %3579 = vmatprep.subr.bf16.mxu1 %v4290_v43  ;;  %v4457_v11 = vpop.f32.mrf.mxu1 }
 0x232   :  { %v4461_v12 = vpop.f32.mrf.mxu1 }
 0x233   :  { %3580 = vmatpush3.bf16.msra.mxu1 %v4290_v43  ;;  %v3722_v43 = vld [vmem:[#allocation5 + $0xe0] sm:$0xff]  }
 0x234   :  { %3581 = vmatprep.subr.bf16.mxu1 %v4294_v44  ;;  %v4468_v14 = vpop.f32.mrf.mxu1 }
 0x237   :  { %3582 = vmatpush3.bf16.msra.mxu1 %v4294_v44  ;;  %v3723_v44 = vld [vmem:[#allocation5 + $0xd8] sm:$0xff]  }
 0x238   :  { %3583 = vmatprep.subr.bf16.mxu1 %v4298_v1 }
 0x23b   :  { %3584 = vmatpush3.bf16.msra.mxu1 %v4298_v1 }
 0x23c   :  { %3585 = vmatprep.subr.bf16.mxu1 %v4302_v45 }
 0x23f   :  { %3586 = vmatpush3.bf16.msra.mxu1 %v4302_v45  ;;  %v3724_v45 = vld [vmem:[#allocation5 + $0xd0] sm:$0xff]  }
 0x240   :  { %3587 = vmatprep.subr.bf16.mxu1 %v4306_v46 }
 0x243   :  { %3588 = vmatpush3.bf16.msra.mxu1 %v4306_v46 }
 0x244   :  { %3589 = vmatprep.subr.bf16.mxu1 %v4310_v47 }
 0x247   :  { %3590 = vmatpush3.bf16.msra.mxu1 %v4310_v47 }
 0x248   :  { %3591 = vmatprep.subr.bf16.mxu1 %v4314_v48 }
 0x24b   :  { %3592 = vmatpush3.bf16.msra.mxu1 %v4314_v48 }
 0x24e   :  { %v3355_v15 = vpop.f32.mrf.mxu1  ;;  %3594 = vmatmul.mubr.bf16.vlgmr.msra.gmra.mxu1 %v3714_v13  ;;  %v1140_v13 = vpop.permute.xlu0 %1139 }
 0x24f   :  { %v885_v16 = vmul.f32 %v3355_v15, %v4263_v58 }
 0x250   :  { %v868_v17 = vpop.f32.mrf.mxu1 }
 0x251   :  { %v883_v18 = vmul.f32 %v868_v17, %v4263_v58  ;;  %v889_v23 = vadd.f32 %v885_v16, %v4267_v2 }
 0x252   :  { %v3356_v19 = vpop.f32.mrf.mxu1 }
 0x253   :  { %v887_v21 = vadd.f32 %v883_v18, %v4267_v2  ;;  %v886_v22 = vmul.f32 %v3356_v19, %v4263_v58  ;;  %v893_v31 = vmax.f32 %v889_v23, 0.0  ;;  %v3731_v23 = vld [vmem:[#allocation5 + $0x118] sm:$0xff]  }
 0x254   :  { %v871_v24 = vpop.f32.mrf.mxu1 }
 0x255   :  { %v890_v26 = vadd.f32 %v886_v22, %v4267_v2  ;;  %v884_v27 = vmul.f32 %v871_v24, %v4263_v58  ;;  %v891_v28 = vmax.f32 %v887_v21, 0.0  ;;  %v922_v38 = vmul.f32 %v913_v35, %v893_v31  ;;  %v3729_v21 = vld [vmem:[#allocation5 + $0x128] sm:$0xff]   ;;  %v3730_v22 = vld [vmem:[#allocation5 + $0x120] sm:$0xff]   ;;  %v1362_v31 = vpop.permute.xlu1 %1361 }
 0x257   :  { %v894_v29 = vmax.f32 %v890_v26, 0.0  ;;  %v888_v30 = vadd.f32 %v884_v27, %v4267_v2  ;;  %v920_v36 = vmul.f32 %v903_v25, %v891_v28  ;;  %v3732_v25 = vld [vmem:[#allocation5 + $0x110] sm:$0xff]  }
 0x259   :  { %v892_v33 = vmax.f32 %v888_v30, 0.0  ;;  %v923_v34 = vmul.f32 %v918_v32, %v894_v29  ;;  %v3733_v30 = vld [vmem:[#allocation5 + $0x108] sm:$0xff]  }
 0x25b   :  { %v921_v37 = vmul.f32 %v908_v20, %v892_v33  ;;  %v925_v40 = vpack.c.bf16 %v923_v34, %v922_v38  ;;  %v3728_v20 = vld [vmem:[#allocation5 + $0x130] sm:$0xff]  }
 0x25d   :  { %v924_v39 = vpack.c.bf16 %v921_v37, %v920_v36  ;;  %v1357_v36 = vpop.permute.xlu0 %1356 }
 0x25f   :  { %3373 = vmatprep.mubr.bf16.mxu0 %v924_v39  ;;  %v3734_v39 = vld [vmem:[#allocation5 + $0x100] sm:$0xff]  }
 0x260   :  { %3374 = vmatmul.mubr.bf16.vlgmr.msra.gmra.mxu0 %v925_v40 }
 0x261   :  { %3398 = vmatpush3.bf16.msra.mxu0 %v4383_v3 }
 0x262   :  { %3399 = vmatprep.subr.bf16.mxu0 %v3720_v41 }
 0x265   :  { %3400 = vmatpush3.bf16.msra.mxu0 %v3720_v41 }
 0x266   :  { %3401 = vmatprep.subr.bf16.mxu0 %v3721_v42 }
 0x269   :  { %3402 = vmatpush3.bf16.msra.mxu0 %v3721_v42 }
 0x26a   :  { %3403 = vmatprep.subr.bf16.mxu0 %v3722_v43 }
 0x26d   :  { %3404 = vmatpush3.bf16.msra.mxu0 %v3722_v43 }
 0x26e   :  { %v3395_v1 = vpop.f32.mrf.mxu1  ;;  %3405 = vmatprep.subr.bf16.mxu0 %v3723_v44 }
 0x26f   :  { %v1112_v46 = vmul.f32 %v3395_v1, %v4263_v58 }
 0x270   :  { %v1095_v47 = vpop.f32.mrf.mxu1 }
 0x271   :  { %v1110_v48 = vmul.f32 %v1095_v47, %v4263_v58  ;;  %3406 = vmatpush3.bf16.msra.mxu0 %v3723_v44  ;;  %v1116_v56 = vadd.f32 %v1112_v46, %v4267_v2  ;;  %v1372_v44 = vpop.permute.xlu1 %1371  ;;  %v3735_v46 = vld [vmem:[#allocation5 + $0x178] sm:$0xff]   ;;  %v1367_v47 = vpop.permute.xlu0 %1366 }
 0x272   :  { %v3396_v50 = vpop.f32.mrf.mxu1  ;;  %3407 = vmatprep.subr.bf16.mxu0 %v3724_v45 }
 0x273   :  { %v1114_v54 = vadd.f32 %v1110_v48, %v4267_v2  ;;  %v1113_v55 = vmul.f32 %v3396_v50, %v4263_v58  ;;  %v1120_v5 = vmax.f32 %v1116_v56, 0.0  ;;  %v3737_v56 = vld [vmem:[#allocation5 + $0x168] sm:$0xff]  }
 0x274   :  { %v1098_v59 = vpop.f32.mrf.mxu1 }
 0x275   :  { %v1117_v61 = vadd.f32 %v1113_v55, %v4267_v2  ;;  %v1111_v62 = vmul.f32 %v1098_v59, %v4263_v58  ;;  %3408 = vmatpush3.bf16.msra.mxu0 %v3724_v45  ;;  %v1118_v0 = vmax.f32 %v1114_v54, 0.0  ;;  %v1149_v17 = vmul.f32 %v1140_v13, %v1120_v5  ;;  %v3736_v55 = vld [vmem:[#allocation5 + $0x170] sm:$0xff]   ;;  %v3738_v59 = vld [vmem:[#allocation5 + $0x160] sm:$0xff]   ;;  %v3741_v5 = vld [vmem:[#allocation5 + $0x148] sm:$0xff]  }
 0x276   :  { %3409 = vmatprep.subr.bf16.mxu0 %v3725_v51 }
 0x277   :  { %v1121_v3 = vmax.f32 %v1117_v61, 0.0  ;;  %v1115_v4 = vadd.f32 %v1111_v62, %v4267_v2  ;;  %v1147_v15 = vmul.f32 %v1130_v60, %v1118_v0  ;;  %v3739_v60 = vld [vmem:[#allocation5 + $0x158] sm:$0xff]   ;;  %v3740_v62 = vld [vmem:[#allocation5 + $0x150] sm:$0xff]  }
 0x279   :  { %v1119_v7 = vmax.f32 %v1115_v4, 0.0  ;;  %3410 = vmatpush3.bf16.msra.mxu0 %v3725_v51  ;;  %v1150_v8 = vmul.f32 %v1145_v6, %v1121_v3  ;;  %v1589_v6 = vpop.permute.xlu1 %1588 }
 0x27a   :  { %3411 = vmatprep.subr.bf16.mxu0 %v3726_v63 }
 0x27b   :  { %v1148_v16 = vmul.f32 %v1135_v52, %v1119_v7  ;;  %v1152_v19 = vpack.c.bf16 %v1150_v8, %v1149_v17 }
 0x27d   :  { %3412 = vmatpush3.bf16.msra.mxu0 %v3726_v63  ;;  %v1151_v18 = vpack.c.bf16 %v1148_v16, %v1147_v15  ;;  %v1584_v15 = vpop.permute.xlu0 %1583 }
 0x27e   :  { %3437 = vmatprep.subr.bf16.mxu0 %v3727_v9 }
 0x27f   :  { %3413 = vmatprep.mubr.bf16.mxu0 %v1151_v18  ;;  %v3742_v18 = vld [vmem:[#allocation5 + $0x140] sm:$0xff]  }
 0x280   :  { %3414 = vmatmul.mubr.bf16.vlgmr.msra.gmra.mxu0 %v1152_v19 }
 0x281   :  { %3438 = vmatpush3.bf16.msra.mxu0 %v3727_v9 }
 0x282   :  { %3439 = vmatprep.subr.bf16.mxu0 %v3728_v20 }
 0x285   :  { %3440 = vmatpush3.bf16.msra.mxu0 %v3728_v20 }
 0x286   :  { %3441 = vmatprep.subr.bf16.mxu0 %v3729_v21 }
 0x289   :  { %3442 = vmatpush3.bf16.msra.mxu0 %v3729_v21 }
 0x28a   :  { %3443 = vmatprep.subr.bf16.mxu0 %v3730_v22 }
 0x28d   :  { %3444 = vmatpush3.bf16.msra.mxu0 %v3730_v22 }
 0x28e   :  { %v3435_v24 = vpop.f32.mrf.mxu1  ;;  %3445 = vmatprep.subr.bf16.mxu0 %v3731_v23 }
 0x28f   :  { %v1339_v26 = vmul.f32 %v3435_v24, %v4263_v58 }
 0x290   :  { %v1322_v27 = vpop.f32.mrf.mxu1 }
 0x291   :  { %v1337_v28 = vmul.f32 %v1322_v27, %v4263_v58  ;;  %3446 = vmatpush3.bf16.msra.mxu0 %v3731_v23  ;;  %v1343_v34 = vadd.f32 %v1339_v26, %v4267_v2  ;;  %v1599_v23 = vpop.permute.xlu1 %1598  ;;  %v3743_v26 = vld [vmem:[#allocation5 + $0x1b8] sm:$0xff]   ;;  %v1594_v27 = vpop.permute.xlu0 %1593 }
 0x292   :  { %v3436_v29 = vpop.f32.mrf.mxu1  ;;  %3447 = vmatprep.subr.bf16.mxu0 %v3732_v25 }
 0x293   :  { %v1341_v32 = vadd.f32 %v1337_v28, %v4267_v2  ;;  %v1340_v33 = vmul.f32 %v3436_v29, %v4263_v58  ;;  %v1347_v43 = vmax.f32 %v1343_v34, 0.0  ;;  %v3745_v34 = vld [vmem:[#allocation5 + $0x1a8] sm:$0xff]  }
 0x294   :  { %v1325_v35 = vpop.f32.mrf.mxu1 }
 0x295   :  { %v1344_v37 = vadd.f32 %v1340_v33, %v4267_v2  ;;  %v1338_v38 = vmul.f32 %v1325_v35, %v4263_v58  ;;  %3448 = vmatpush3.bf16.msra.mxu0 %v3732_v25  ;;  %v1345_v40 = vmax.f32 %v1341_v32, 0.0  ;;  %v1376_v51 = vmul.f32 %v1367_v47, %v1347_v43  ;;  %v3744_v33 = vld [vmem:[#allocation5 + $0x1b0] sm:$0xff]   ;;  %v3746_v35 = vld [vmem:[#allocation5 + $0x1a0] sm:$0xff]   ;;  %v3749_v43 = vld [vmem:[#allocation5 + $0x188] sm:$0xff]  }
 0x296   :  { %3449 = vmatprep.subr.bf16.mxu0 %v3733_v30 }
 0x297   :  { %v1348_v41 = vmax.f32 %v1344_v37, 0.0  ;;  %v1342_v42 = vadd.f32 %v1338_v38, %v4267_v2  ;;  %v1374_v48 = vmul.f32 %v1357_v36, %v1345_v40  ;;  %v3747_v36 = vld [vmem:[#allocation5 + $0x198] sm:$0xff]   ;;  %v3748_v38 = vld [vmem:[#allocation5 + $0x190] sm:$0xff]  }
 0x299   :  { %v1346_v1 = vmax.f32 %v1342_v42, 0.0  ;;  %3450 = vmatpush3.bf16.msra.mxu0 %v3733_v30  ;;  %v1377_v45 = vmul.f32 %v1372_v44, %v1348_v41  ;;  %v1816_v44 = vpop.permute.xlu1 %1815 }
 0x29a   :  { %3451 = vmatprep.subr.bf16.mxu0 %v3734_v39 }
 0x29b   :  { %v1375_v50 = vmul.f32 %v1362_v31, %v1346_v1  ;;  %v1379_v54 = vpack.c.bf16 %v1377_v45, %v1376_v51 }
 0x29d   :  { %3452 = vmatpush3.bf16.msra.mxu0 %v3734_v39  ;;  %v1378_v52 = vpack.c.bf16 %v1375_v50, %v1374_v48  ;;  %v1811_v48 = vpop.permute.xlu0 %1810 }
 0x29e   :  { %3477 = vmatprep.subr.bf16.mxu0 %v3735_v46 }
 0x29f   :  { %3453 = vmatprep.mubr.bf16.mxu0 %v1378_v52  ;;  %v3750_v52 = vld [vmem:[#allocation5 + $0x180] sm:$0xff]  }
 0x2a0   :  { %3454 = vmatmul.mubr.bf16.vlgmr.msra.gmra.mxu0 %v1379_v54 }
 0x2a1   :  { %3478 = vmatpush3.bf16.msra.mxu0 %v3735_v46 }
 0x2a2   :  { %3479 = vmatprep.subr.bf16.mxu0 %v3736_v55 }
 0x2a5   :  { %3480 = vmatpush3.bf16.msra.mxu0 %v3736_v55 }
 0x2a6   :  { %3481 = vmatprep.subr.bf16.mxu0 %v3737_v56 }
 0x2a9   :  { %3482 = vmatpush3.bf16.msra.mxu0 %v3737_v56 }
 0x2aa   :  { %3483 = vmatprep.subr.bf16.mxu0 %v3738_v59 }
 0x2ad   :  { %3484 = vmatpush3.bf16.msra.mxu0 %v3738_v59 }
 0x2ae   :  { %v3475_v61 = vpop.f32.mrf.mxu1  ;;  %3485 = vmatprep.subr.bf16.mxu0 %v3739_v60 }
 0x2af   :  { %v1566_v63 = vmul.f32 %v3475_v61, %v4263_v58 }
 0x2b0   :  { %v1549_v0 = vpop.f32.mrf.mxu1 }
 0x2b1   :  { %v1564_v3 = vmul.f32 %v1549_v0, %v4263_v58  ;;  %3486 = vmatpush3.bf16.msra.mxu0 %v3739_v60  ;;  %v1570_v9 = vadd.f32 %v1566_v63, %v4267_v2  ;;  %v1826_v60 = vpop.permute.xlu1 %1825  ;;  %v3751_v63 = vld [vmem:[#allocation5 + $0x1f8] sm:$0xff]   ;;  %v1821_v0 = vpop.permute.xlu0 %1820 }
 0x2b2   :  { %v3476_v4 = vpop.f32.mrf.mxu1  ;;  %3487 = vmatprep.subr.bf16.mxu0 %v3740_v62 }
 0x2b3   :  { %v1568_v7 = vadd.f32 %v1564_v3, %v4267_v2  ;;  %v1567_v8 = vmul.f32 %v3476_v4, %v4263_v58  ;;  %v1574_v22 = vmax.f32 %v1570_v9, 0.0  ;;  %v3753_v9 = vld [vmem:[#allocation5 + $0x1e8] sm:$0xff]  }
 0x2b4   :  { %v1552_v13 = vpop.f32.mrf.mxu1 }
 0x2b5   :  { %v1571_v16 = vadd.f32 %v1567_v8, %v4267_v2  ;;  %v1565_v17 = vmul.f32 %v1552_v13, %v4263_v58  ;;  %3488 = vmatpush3.bf16.msra.mxu0 %v3740_v62  ;;  %v1572_v19 = vmax.f32 %v1568_v7, 0.0  ;;  %v1603_v30 = vmul.f32 %v1594_v27, %v1574_v22  ;;  %v3752_v8 = vld [vmem:[#allocation5 + $0x1f0] sm:$0xff]   ;;  %v3754_v13 = vld [vmem:[#allocation5 + $0x1e0] sm:$0xff]   ;;  %v3757_v22 = vld [vmem:[#allocation5 + $0x1c8] sm:$0xff]  }
 0x2b6   :  { %3489 = vmatprep.subr.bf16.mxu0 %v3741_v5 }
 0x2b7   :  { %v1575_v20 = vmax.f32 %v1571_v16, 0.0  ;;  %v1569_v21 = vadd.f32 %v1565_v17, %v4267_v2  ;;  %v1601_v28 = vmul.f32 %v1584_v15, %v1572_v19  ;;  %v3755_v15 = vld [vmem:[#allocation5 + $0x1d8] sm:$0xff]   ;;  %v3756_v17 = vld [vmem:[#allocation5 + $0x1d0] sm:$0xff]  }
 0x2b9   :  { %v1573_v24 = vmax.f32 %v1569_v21, 0.0  ;;  %3490 = vmatpush3.bf16.msra.mxu0 %v3741_v5  ;;  %v1604_v25 = vmul.f32 %v1599_v23, %v1575_v20  ;;  %v2043_v23 = vpop.permute.xlu1 %2042 }
 0x2ba   :  { %3491 = vmatprep.subr.bf16.mxu0 %v3742_v18 }
 0x2bb   :  { %v1602_v29 = vmul.f32 %v1589_v6, %v1573_v24  ;;  %v1606_v32 = vpack.c.bf16 %v1604_v25, %v1603_v30 }
 0x2bd   :  { %3492 = vmatpush3.bf16.msra.mxu0 %v3742_v18  ;;  %v1605_v31 = vpack.c.bf16 %v1602_v29, %v1601_v28  ;;  %v2038_v28 = vpop.permute.xlu0 %2037 }
 0x2be   :  { %3517 = vmatprep.subr.bf16.mxu0 %v3743_v26 }
 0x2bf   :  { %3493 = vmatprep.mubr.bf16.mxu0 %v1605_v31  ;;  %v3758_v31 = vld [vmem:[#allocation5 + $0x1c0] sm:$0xff]  }
 0x2c0   :  { %3494 = vmatmul.mubr.bf16.vlgmr.msra.gmra.mxu0 %v1606_v32 }
 0x2c1   :  { %3518 = vmatpush3.bf16.msra.mxu0 %v3743_v26 }
 0x2c2   :  { %3519 = vmatprep.subr.bf16.mxu0 %v3744_v33 }
 0x2c5   :  { %3520 = vmatpush3.bf16.msra.mxu0 %v3744_v33 }
 0x2c6   :  { %3521 = vmatprep.subr.bf16.mxu0 %v3745_v34 }
 0x2c9   :  { %3522 = vmatpush3.bf16.msra.mxu0 %v3745_v34 }
 0x2ca   :  { %3523 = vmatprep.subr.bf16.mxu0 %v3746_v35 }
 0x2cd   :  { %3524 = vmatpush3.bf16.msra.mxu0 %v3746_v35 }
 0x2ce   :  { %v3515_v37 = vpop.f32.mrf.mxu1  ;;  %3525 = vmatprep.subr.bf16.mxu0 %v3747_v36 }
 0x2cf   :  { %v1793_v39 = vmul.f32 %v3515_v37, %v4263_v58 }
 0x2d0   :  { %v1776_v40 = vpop.f32.mrf.mxu1 }
 0x2d1   :  { %v1791_v41 = vmul.f32 %v1776_v40, %v4263_v58  ;;  %3526 = vmatpush3.bf16.msra.mxu0 %v3747_v36  ;;  %v1797_v46 = vadd.f32 %v1793_v39, %v4267_v2  ;;  %v2053_v36 = vpop.permute.xlu1 %2052  ;;  %v3759_v39 = vld [vmem:[#allocation5 + $0x238] sm:$0xff]   ;;  %v2048_v40 = vpop.permute.xlu0 %2047 }
 0x2d2   :  { %v3516_v42 = vpop.f32.mrf.mxu1  ;;  %3527 = vmatprep.subr.bf16.mxu0 %v3748_v38 }
 0x2d3   :  { %v1795_v1 = vadd.f32 %v1791_v41, %v4267_v2  ;;  %v1794_v45 = vmul.f32 %v3516_v42, %v4263_v58  ;;  %v1801_v59 = vmax.f32 %v1797_v46, 0.0  ;;  %v3761_v46 = vld [vmem:[#allocation5 + $0x228] sm:$0xff]  }
 0x2d4   :  { %v1779_v47 = vpop.f32.mrf.mxu1 }
 0x2d5   :  { %v1798_v50 = vadd.f32 %v1794_v45, %v4267_v2  ;;  %v1792_v51 = vmul.f32 %v1779_v47, %v4263_v58  ;;  %3528 = vmatpush3.bf16.msra.mxu0 %v3748_v38  ;;  %v1799_v54 = vmax.f32 %v1795_v1, 0.0  ;;  %v1830_v5 = vmul.f32 %v1821_v0, %v1801_v59  ;;  %v3760_v45 = vld [vmem:[#allocation5 + $0x230] sm:$0xff]   ;;  %v3762_v47 = vld [vmem:[#allocation5 + $0x220] sm:$0xff]   ;;  %v3765_v59 = vld [vmem:[#allocation5 + $0x208] sm:$0xff]  }
 0x2d6   :  { %3529 = vmatprep.subr.bf16.mxu0 %v3749_v43 }
 0x2d7   :  { %v1802_v55 = vmax.f32 %v1798_v50, 0.0  ;;  %v1796_v56 = vadd.f32 %v1792_v51, %v4267_v2  ;;  %v1828_v3 = vmul.f32 %v1811_v48, %v1799_v54  ;;  %v3763_v48 = vld [vmem:[#allocation5 + $0x218] sm:$0xff]   ;;  %v3764_v51 = vld [vmem:[#allocation5 + $0x210] sm:$0xff]  }
 0x2d9   :  { %v1800_v61 = vmax.f32 %v1796_v56, 0.0  ;;  %3530 = vmatpush3.bf16.msra.mxu0 %v3749_v43  ;;  %v1831_v62 = vmul.f32 %v1826_v60, %v1802_v55  ;;  %v2270_v60 = vpop.permute.xlu1 %2269 }
 0x2da   :  { %3531 = vmatprep.subr.bf16.mxu0 %v3750_v52 }
 0x2db   :  { %v1829_v4 = vmul.f32 %v1816_v44, %v1800_v61  ;;  %v1833_v7 = vpack.c.bf16 %v1831_v62, %v1830_v5 }
 0x2dd   :  { %3532 = vmatpush3.bf16.msra.mxu0 %v3750_v52  ;;  %v1832_v6 = vpack.c.bf16 %v1829_v4, %v1828_v3  ;;  %v2265_v3 = vpop.permute.xlu0 %2264 }
 0x2de   :  { %3557 = vmatprep.subr.bf16.mxu0 %v3751_v63 }
 0x2df   :  { %3533 = vmatprep.mubr.bf16.mxu0 %v1832_v6  ;;  %v3766_v6 = vld [vmem:[#allocation5 + $0x200] sm:$0xff]  }
 0x2e0   :  { %3534 = vmatmul.mubr.bf16.vlgmr.msra.gmra.mxu0 %v1833_v7 }
 0x2e1   :  { %3558 = vmatpush3.bf16.msra.mxu0 %v3751_v63 }
 0x2e2   :  { %3559 = vmatprep.subr.bf16.mxu0 %v3752_v8 }
 0x2e5   :  { %3560 = vmatpush3.bf16.msra.mxu0 %v3752_v8 }
 0x2e6   :  { %3561 = vmatprep.subr.bf16.mxu0 %v3753_v9 }
 0x2e9   :  { %3562 = vmatpush3.bf16.msra.mxu0 %v3753_v9 }
 0x2ea   :  { %3563 = vmatprep.subr.bf16.mxu0 %v3754_v13 }
 0x2ed   :  { %3564 = vmatpush3.bf16.msra.mxu0 %v3754_v13 }
 0x2ee   :  { %v3555_v16 = vpop.f32.mrf.mxu1  ;;  %3565 = vmatprep.subr.bf16.mxu0 %v3755_v15 }
 0x2ef   :  { %v2020_v18 = vmul.f32 %v3555_v16, %v4263_v58 }
 0x2f0   :  { %v2003_v19 = vpop.f32.mrf.mxu1 }
 0x2f1   :  { %v2018_v20 = vmul.f32 %v2003_v19, %v4263_v58  ;;  %3566 = vmatpush3.bf16.msra.mxu0 %v3755_v15  ;;  %v2024_v26 = vadd.f32 %v2020_v18, %v4267_v2  ;;  %v2280_v15 = vpop.permute.xlu1 %2279  ;;  %v2275_v18 = vpop.permute.xlu0 %2274 }
 0x2f2   :  { %v3556_v21 = vpop.f32.mrf.mxu1  ;;  %3567 = vmatprep.subr.bf16.mxu0 %v3756_v17 }
 0x2f3   :  { %v2022_v24 = vadd.f32 %v2018_v20, %v4267_v2  ;;  %v2021_v25 = vmul.f32 %v3556_v21, %v4263_v58  ;;  %v2028_v35 = vmax.f32 %v2024_v26, 0.0  ;;  %v3771_v26 = vld [vmem:[#allocation8 + $0x18] sm:$0xff]  }
 0x2f4   :  { %v2006_v27 = vpop.f32.mrf.mxu1 }
 0x2f5   :  { %v2025_v29 = vadd.f32 %v2021_v25, %v4267_v2  ;;  %v2019_v30 = vmul.f32 %v2006_v27, %v4263_v58  ;;  %3568 = vmatpush3.bf16.msra.mxu0 %v3756_v17  ;;  %v2026_v32 = vmax.f32 %v2022_v24, 0.0  ;;  %v2057_v43 = vmul.f32 %v2048_v40, %v2028_v35  ;;  %v3768_v24 = vld [vmem:[#allocation8 + $0x30] sm:$0xff]   ;;  %v3770_v25 = vld [vmem:[#allocation8 + $0x20] sm:$0xff]  }
 0x2f6   :  { %3569 = vmatprep.subr.bf16.mxu0 %v3757_v22  ;;  %v3772_v27 = vld [vmem:[#allocation8 + $0x10] sm:$0xff]  }
 0x2f7   :  { %v2029_v33 = vmax.f32 %v2025_v29, 0.0  ;;  %v2023_v34 = vadd.f32 %v2019_v30, %v4267_v2  ;;  %v2055_v41 = vmul.f32 %v2038_v28, %v2026_v32  ;;  %v3773_v28 = vld [vmem:[#allocation8 + $0x8] sm:$0xff]   ;;  %v3335_v29 = vpop.f32.mrf.mxu0  ;;  %v3775_v30 = vld [vmem:[#allocation7 + $0x38] sm:$0xff]   ;;  %v3776_v32 = vld [vmem:[#allocation7 + $0x30] sm:$0xff]  }
 0x2f8   :  { %3617 = vmatprep.subr.bf16.mxu1 %v3775_v30  ;;  %v3780_v40 = vld [vmem:[#allocation7 + $0x10] sm:$0xff]  }
 0x2f9   :  { %v2027_v37 = vmax.f32 %v2023_v34, 0.0  ;;  %3570 = vmatpush3.bf16.msra.mxu0 %v3757_v22  ;;  %v2058_v38 = vmul.f32 %v2053_v36, %v2029_v33  ;;  %3618 = vmatpush3.bf16.msra.mxu1 %v3775_v30  ;;  %v3777_v34 = vld [vmem:[#allocation7 + $0x28] sm:$0xff]  }
 0x2fa   :  { %3571 = vmatprep.subr.bf16.mxu0 %v3758_v31  ;;  %3619 = vmatprep.subr.bf16.mxu1 %v3776_v32 }
 0x2fb   :  { %v2056_v42 = vmul.f32 %v2043_v23, %v2027_v37  ;;  %v2060_v1 = vpack.c.bf16 %v2058_v38, %v2057_v43  ;;  %v3767_v23 = vld [vmem:[#allocation8 + $0x38] sm:$0xff]   ;;  %v3778_v37 = vld [vmem:[#allocation7 + $0x20] sm:$0xff]  }
 0x2fc   :  { %v3782_v43 = vld [vmem:[#allocation7] sm:$0xff]  }
 0x2fd   :  { %3572 = vmatpush3.bf16.msra.mxu0 %v3758_v31  ;;  %v2059_v44 = vpack.c.bf16 %v2056_v42, %v2055_v41  ;;  %v802_v31 = vpop.f32.mrf.mxu0  ;;  %3620 = vmatpush3.bf16.msra.mxu1 %v3776_v32  ;;  %v3781_v41 = vld [vmem:[#allocation7 + $0x8] sm:$0xff]  }
 0x2fe   :  { %3597 = vmatprep.subr.bf16.mxu0 %v3759_v39  ;;  %3621 = vmatprep.subr.bf16.mxu1 %v3777_v34 }
 0x2ff   :  { %3573 = vmatprep.mubr.bf16.mxu0 %v2059_v44  ;;  %v3336_v33 = vpop.f32.mrf.mxu0 }
 0x300   :  { %3574 = vmatmul.mubr.bf16.vlgmr.msra.gmra.mxu0 %v2060_v1 }
 0x301   :  { %3598 = vmatpush3.bf16.msra.mxu0 %v3759_v39  ;;  %v805_v35 = vpop.f32.mrf.mxu0  ;;  %3622 = vmatpush3.bf16.msra.mxu1 %v3777_v34  ;;  %v3779_v39 = vld [vmem:[#allocation7 + $0x18] sm:$0xff]  }
 0x302   :  { %3599 = vmatprep.subr.bf16.mxu0 %v3760_v45  ;;  %3623 = vmatprep.subr.bf16.mxu1 %v3778_v37 }
 0x305   :  { %3600 = vmatpush3.bf16.msra.mxu0 %v3760_v45  ;;  %3624 = vmatpush3.bf16.msra.mxu1 %v3778_v37 }
 0x306   :  { %3601 = vmatprep.subr.bf16.mxu0 %v3761_v46  ;;  %3625 = vmatprep.subr.bf16.mxu1 %v3779_v39 }
 0x309   :  { %3602 = vmatpush3.bf16.msra.mxu0 %v3761_v46  ;;  %3626 = vmatpush3.bf16.msra.mxu1 %v3779_v39 }
 0x30a   :  { %3603 = vmatprep.subr.bf16.mxu0 %v3762_v47  ;;  %3627 = vmatprep.subr.bf16.mxu1 %v3780_v40 }
 0x30d   :  { %3604 = vmatpush3.bf16.msra.mxu0 %v3762_v47  ;;  %3628 = vmatpush3.bf16.msra.mxu1 %v3780_v40 }
 0x30e   :  { %v3595_v50 = vpop.f32.mrf.mxu1  ;;  %3605 = vmatprep.subr.bf16.mxu0 %v3763_v48  ;;  %3629 = vmatprep.subr.bf16.mxu1 %v3781_v41 }
 0x30f   :  { %v2247_v52 = vmul.f32 %v3595_v50, %v4263_v58 }
 0x310   :  { %v2230_v54 = vpop.f32.mrf.mxu1 }
 0x311   :  { %v2245_v55 = vmul.f32 %v2230_v54, %v4263_v58  ;;  %3606 = vmatpush3.bf16.msra.mxu0 %v3763_v48  ;;  %v2251_v63 = vadd.f32 %v2247_v52, %v4267_v2  ;;  %3630 = vmatpush3.bf16.msra.mxu1 %v3781_v41 }
 0x312   :  { %v3596_v56 = vpop.f32.mrf.mxu1  ;;  %3607 = vmatprep.subr.bf16.mxu0 %v3764_v51  ;;  %3631 = vmatprep.subr.bf16.mxu1 %v3782_v43 }
 0x313   :  { %v2249_v61 = vadd.f32 %v2245_v55, %v4267_v2  ;;  %v2248_v62 = vmul.f32 %v3596_v56, %v4263_v58  ;;  %v2255_v13 = vmax.f32 %v2251_v63, 0.0 }
 0x314   :  { %v2233_v0 = vpop.f32.mrf.mxu1 }
 0x315   :  { %v2252_v4 = vadd.f32 %v2248_v62, %v4267_v2  ;;  %v2246_v5 = vmul.f32 %v2233_v0, %v4263_v58  ;;  %3608 = vmatpush3.bf16.msra.mxu0 %v3764_v51  ;;  %v2253_v7 = vmax.f32 %v2249_v61, 0.0  ;;  %v2284_v21 = vmul.f32 %v2275_v18, %v2255_v13  ;;  %3632 = vmatpush3.bf16.msra.mxu1 %v3782_v43 }
 0x316   :  { %3609 = vmatprep.subr.bf16.mxu0 %v3765_v59 }
 0x317   :  { %v2256_v8 = vmax.f32 %v2252_v4, 0.0  ;;  %v2250_v9 = vadd.f32 %v2246_v5, %v4267_v2  ;;  %v2282_v19 = vmul.f32 %v2265_v3, %v2253_v7  ;;  %v3769_v2 = vld [vmem:[#allocation8 + $0x28] sm:$0xff]   ;;  %v803_v3 = vadd.f32 %v802_v31, %v4457_v11 }
 0x318   :  { %v811_v4 = vadd.f32 %v3335_v29, %v4453_v10  ;;  %v806_v5 = vadd.f32 %v805_v35, %v4468_v14 }
 0x319   :  { %v2254_v16 = vmax.f32 %v2250_v9, 0.0  ;;  %3610 = vmatpush3.bf16.msra.mxu0 %v3765_v59  ;;  %v2285_v17 = vmul.f32 %v2280_v15, %v2256_v8  ;;  %v814_v8 = vadd.f32 %v3336_v33, %v4461_v12 }
 0x31a   :  { %3611 = vmatprep.subr.bf16.mxu0 %v3766_v6 }
 0x31b   :  { %v2283_v20 = vmul.f32 %v2270_v60, %v2254_v16  ;;  %v2287_v58 = vpack.c.bf16 %v2285_v17, %v2284_v21 }
 0x31d   :  { %3612 = vmatpush3.bf16.msra.mxu0 %v3766_v6  ;;  %v2286_v22 = vpack.c.bf16 %v2283_v20, %v2282_v19 }
 0x31e   :  { %3637 = vmatprep.subr.bf16.mxu0 %v3767_v23 }
 0x31f   :  { %3613 = vmatprep.mubr.bf16.mxu0 %v2286_v22 }
 0x320   :  { %3614 = vmatmul.mubr.bf16.vlgmr.msra.gmra.mxu0 %v2287_v58  ;;  %v3375_v36 = vpop.f32.mrf.mxu0 }
 0x321   :  { %3653 = vmatprep.mubr.bf16.mxu0 %v4346_v53  ;;  %3638 = vmatpush3.bf16.msra.mxu0 %v3767_v23  ;;  %v3774_v53 = vld [vmem:[#allocation8] sm:$0xff]   ;;  %v1042_v9 = vadd.f32 %v3375_v36, %v811_v4 }
 0x322   :  { %3639 = vmatprep.subr.bf16.mxu0 %v3768_v24  ;;  %v1025_v38 = vpop.f32.mrf.mxu0 }
 0x323   :  { %v1040_v6 = vadd.f32 %v1025_v38, %v803_v3 }
 0x325   :  { %3640 = vmatpush3.bf16.msra.mxu0 %v3768_v24 }
 0x326   :  { %3641 = vmatprep.subr.bf16.mxu0 %v3769_v2 }
 0x329   :  { %3642 = vmatpush3.bf16.msra.mxu0 %v3769_v2 }
 0x32a   :  { %3643 = vmatprep.subr.bf16.mxu0 %v3770_v25 }
 0x32d   :  { %3644 = vmatpush3.bf16.msra.mxu0 %v3770_v25 }
 0x32e   :  { %3645 = vmatprep.subr.bf16.mxu0 %v3771_v26 }
 0x331   :  { %3646 = vmatpush3.bf16.msra.mxu0 %v3771_v26 }
 0x332   :  { %3647 = vmatprep.subr.bf16.mxu0 %v3772_v27 }
 0x335   :  { %3648 = vmatpush3.bf16.msra.mxu0 %v3772_v27 }
 0x336   :  { %3649 = vmatprep.subr.bf16.mxu0 %v3773_v28 }
 0x339   :  { %3650 = vmatpush3.bf16.msra.mxu0 %v3773_v28 }
 0x33a   :  { %3651 = vmatprep.subr.bf16.mxu0 %v3774_v53 }
 0x33d   :  { %3652 = vmatpush3.bf16.msra.mxu0 %v3774_v53 }
 0x340   :  { %3654 = vmatmul.mubr.bf16.vlgmr.msra.gmra.mxu0 %v4367_v57  ;;  %v3376_v57 = vpop.f32.mrf.mxu0 }
 0x341   :  { %v1043_v16 = vadd.f32 %v3376_v57, %v814_v8 }
 0x342   :  { %v1028_v42 = vpop.f32.mrf.mxu0 }
 0x343   :  { %v1041_v13 = vadd.f32 %v1028_v42, %v806_v5 }
 0x344   :  { %v3415_v44 = vpop.f32.mrf.mxu0 }
 0x345   :  { %v1269_v17 = vadd.f32 %v3415_v44, %v1042_v9  ;;  %v2407_v9 = vld [vmem:[%s4592_s8] sm:$0x1] }
 0x346   :  { %v1252_v1 = vpop.f32.mrf.mxu0 }
 0x347   :  { %v1267_v15 = vadd.f32 %v1252_v1, %v1040_v6  ;;  %v2406_v6 = vld [vmem:[%s4591_s7] sm:$0x1] }
 0x348   :  { %v3416_v45 = vpop.f32.mrf.mxu0 }
 0x349   :  { %v1270_v21 = vadd.f32 %v3416_v45, %v1043_v16 }
 0x34a   :  { %v1255_v46 = vpop.f32.mrf.mxu0 }
 0x34b   :  { %v1268_v18 = vadd.f32 %v1255_v46, %v1041_v13 }
 0x360   :  { %v3455_v47 = vpop.f32.mrf.mxu0 }
 0x361   :  { %v1496_v22 = vadd.f32 %v3455_v47, %v1269_v17 }
 0x362   :  { %v1479_v48 = vpop.f32.mrf.mxu0 }
 0x363   :  { %v1494_v19 = vadd.f32 %v1479_v48, %v1267_v15 }
 0x364   :  { %v3456_v50 = vpop.f32.mrf.mxu0 }
 0x365   :  { %v1497_v10 = vadd.f32 %v3456_v50, %v1270_v21 }
 0x366   :  { %v1482_v51 = vpop.f32.mrf.mxu0 }
 0x367   :  { %v1495_v58 = vadd.f32 %v1482_v51, %v1268_v18 }
 0x380   :  { %v3495_v52 = vpop.f32.mrf.mxu0 }
 0x381   :  { %v1723_v24 = vadd.f32 %v3495_v52, %v1496_v22 }
 0x382   :  { %v1706_v54 = vpop.f32.mrf.mxu0 }
 0x383   :  { %v1721_v11 = vadd.f32 %v1706_v54, %v1494_v19 }
 0x384   :  { %v3496_v55 = vpop.f32.mrf.mxu0 }
 0x385   :  { %v1724_v26 = vadd.f32 %v3496_v55, %v1497_v10 }
 0x386   :  { %v1709_v56 = vpop.f32.mrf.mxu0 }
 0x387   :  { %v1722_v14 = vadd.f32 %v1709_v56, %v1495_v58 }
 0x3a0   :  { %v3535_v59 = vpop.f32.mrf.mxu0 }
 0x3a1   :  { %v1950_v12 = vadd.f32 %v3535_v59, %v1723_v24 }
 0x3a2   :  { %v1933_v60 = vpop.f32.mrf.mxu0 }
 0x3a3   :  { %v1948_v2 = vadd.f32 %v1933_v60, %v1721_v11 }
 0x3a4   :  { %v3536_v61 = vpop.f32.mrf.mxu0 }
 0x3a5   :  { %v1951_v29 = vadd.f32 %v3536_v61, %v1724_v26 }
 0x3a6   :  { %v1936_v62 = vpop.f32.mrf.mxu0 }
 0x3a7   :  { %v1949_v27 = vadd.f32 %v1936_v62, %v1722_v14 }
 0x3c0   :  { %v3575_v63 = vpop.f32.mrf.mxu0 }
 0x3c1   :  { %v2177_v30 = vadd.f32 %v3575_v63, %v1950_v12 }
 0x3c2   :  { %v2160_v0 = vpop.f32.mrf.mxu0 }
 0x3c3   :  { %v2175_v28 = vadd.f32 %v2160_v0, %v1948_v2 }
 0x3c4   :  { %v3576_v7 = vpop.f32.mrf.mxu0 }
 0x3c5   :  { %v2178_v34 = vadd.f32 %v3576_v7, %v1951_v29 }
 0x3c6   :  { %v2163_v20 = vpop.f32.mrf.mxu0 }
 0x3c7   :  { %v2176_v31 = vadd.f32 %v2163_v20, %v1949_v27 }
 0x3e0   :  { %v3615_v23 = vpop.f32.mrf.mxu0 }
 0x3e1   :  { %v2404_v35 = vadd.f32 %v3615_v23, %v2177_v30 }
 0x3e2   :  { %v2387_v25 = vpop.f32.mrf.mxu0 }
 0x3e3   :  { %v2402_v32 = vadd.f32 %v2387_v25, %v2175_v28  ;;  %v2419_v40 = vmul.f32 %v2404_v35, %v2404_v35 }
 0x3e4   :  { %v3616_v53 = vpop.f32.mrf.mxu0 }
 0x3e5   :  { %v2417_v37 = vmul.f32 %v2402_v32, %v2402_v32  ;;  %v2405_v38 = vadd.f32 %v3616_v53, %v2178_v34 }
 0x3e6   :  { %v2390_v33 = vpop.f32.mrf.mxu0 }
 0x3e7   :  { %v2403_v36 = vadd.f32 %v2390_v33, %v2176_v31  ;;  %v2420_v43 = vmul.f32 %v2405_v38, %v2405_v38 }
 0x3e9   :  { %v2408_v39 = vadd.f32 %v2403_v36, %v2402_v32  ;;  %v2418_v57 = vmul.f32 %v2403_v36, %v2403_v36 }
 0x3eb   :  { %v2409_v41 = vadd.f32 %v2408_v39, %v2404_v35  ;;  %v2421_v42 = vadd.f32 %v2418_v57, %v2417_v37 }
 0x3ed   :  { %v2410_v44 = vadd.f32 %v2409_v41, %v2405_v38  ;;  %v2422_v1 = vadd.f32 %v2421_v42, %v2419_v40 }
 0x3ef   :  { %v2411_v45 = vrot.slane %v2410_v44, 4  ;;  %v2423_v46 = vadd.f32 %v2422_v1, %v2420_v43 }
 0x3f1   :  { %v2412_v47 = vadd.f32 %v2411_v45, %v2410_v44  ;;  %v2424_v48 = vrot.slane %v2423_v46, 4 }
 0x3f3   :  { %v2413_v50 = vrot.slane %v2412_v47, 2  ;;  %v2425_v51 = vadd.f32 %v2424_v48, %v2423_v46 }
 0x3f5   :  { %v2414_v52 = vadd.f32 %v2413_v50, %v2412_v47  ;;  %v2426_v54 = vrot.slane %v2425_v51, 2 }
 0x3f7   :  { %v2415_v55 = vrot.slane %v2414_v52, 1  ;;  %v2427_v56 = vadd.f32 %v2426_v54, %v2425_v51 }
 0x3f9   :  { %v2416_v59 = vadd.f32 %v2415_v55, %v2414_v52  ;;  %v2428_v60 = vrot.slane %v2427_v56, 1 }
 0x3fb   :  { %v2429_v61 = vadd.f32 %v2428_v60, %v2427_v56  ;;  %v2430_v62 = vmul.f32 0.03125, %v2416_v59 }
 0x3fd   :  { %v2431_v63 = vmul.f32 0.03125, %v2429_v61  ;;  %v2432_v0 = vmul.f32 %v2430_v62, %v2430_v62 }
 0x3ff   :  { %v2433_v3 = vsub.f32 %v2431_v63, %v2432_v0 }
 0x400   :  { %v4541_v12 = vpop.f32.mrf.mxu0 }
 0x401   :  { %v2434_v4 = vmax.f32 %v2433_v3, 0.0 }
 0x402   :  { %v4543_v27 = vpop.f32.mrf.mxu0 }
 0x403   :  { %v2435_v5 = vadd.f32 1e-05, %v2434_v4  ;;  %v2757_v29 = vmul.f32 %v4543_v27, %v4543_v27 }
 0x404   :  { %v4545_v28 = vpop.f32.mrf.mxu0 }
 0x405   :  { %3785 = vrsqrt.f32 %v2435_v5 }
 0x406   :  { %v4547_v53 = vpop.f32.mrf.mxu0 }
 0x407   :  { %v2748_v30 = vadd.f32 %v4547_v53, %v4543_v27  ;;  %v2758_v31 = vmul.f32 %v4547_v53, %v4547_v53 }
 0x409   :  { %v2749_v33 = vadd.f32 %v4541_v12, %v2748_v30  ;;  %v2761_v34 = vadd.f32 %v2758_v31, %v2757_v29  ;;  %v2746_v31 = vld [vmem:[%s4597_s13] sm:$0x1] }
 0x412   :  { %v3786_v7 = vpop.eup %3785 }
 0x413   :  { %v2437_v8 = vmul.f32 %v3786_v7, %v2406_v6 }
 0x415   :  { %v2438_v13 = vmul.f32 %v2437_v8, %v2430_v62  ;;  %v2444_v15 = vrot.slane %v2437_v8, %v4257_v49 }
 0x417   :  { %v2447_v16 = vmul.f32 %v2444_v15, %v2403_v36  ;;  %v2439_v17 = vsub.f32 %v2407_v9, %v2438_v13  ;;  %v2446_v18 = vmul.f32 %v2444_v15, %v2402_v32  ;;  %v2448_v19 = vmul.f32 %v2444_v15, %v2404_v35 }
 0x418   :  { %v2449_v20 = vmul.f32 %v2444_v15, %v2405_v38  ;;  %v2759_v32 = vmul.f32 %v4541_v12, %v4541_v12  ;;  %v2760_v35 = vmul.f32 %v4545_v28, %v4545_v28  ;;  %v2750_v36 = vadd.f32 %v4545_v28, %v2749_v33 }
 0x419   :  { %v2454_v21 = vrot.slane %v2439_v17, %v4257_v49 }
 0x41a   :  { %v2762_v37 = vadd.f32 %v2761_v34, %v2759_v32  ;;  %v2751_v38 = vrot.slane %v2750_v36, 4  ;;  %v2747_v34 = vld [vmem:[%s4598_s14] sm:$0x1] }
 0x41b   :  { %v2456_v22 = vadd.f32 %v2454_v21, %v2446_v18  ;;  %v2457_v58 = vadd.f32 %v2454_v21, %v2447_v16  ;;  %v2458_v11 = vadd.f32 %v2454_v21, %v2448_v19  ;;  %v2459_v23 = vadd.f32 %v2454_v21, %v2449_v20 }
 0x41c   :  { %v2763_v39 = vadd.f32 %v2762_v37, %v2760_v35  ;;  %v2752_v57 = vadd.f32 %v2751_v38, %v2750_v36  ;;  %v2579_v35 = vld [vmem:[%s4594_s10] sm:$0x1]  ;;  %s3914_s10 = smov [#allocation10]  }
 0x41d   :  { %v2460_v10 = vmax.f32 %v2456_v22, 0.0  ;;  %v2461_v24 = vmax.f32 %v2457_v58, 0.0  ;;  %v2462_v14 = vmax.f32 %v2458_v11, 0.0  ;;  %v2463_v2 = vmax.f32 %v2459_v23, 0.0 }
 0x41e   :  { %v2764_v40 = vrot.slane %v2763_v39, 4  ;;  %v2753_v41 = vrot.slane %v2752_v57, 2 }
 0x41f   :  { %v2464_v25 = vpack.c.bf16 %v2461_v24, %v2460_v10  ;;  %v2465_v26 = vpack.c.bf16 %v2463_v2, %v2462_v14 }
 0x420   :  { %v2765_v42 = vadd.f32 %v2764_v40, %v2763_v39  ;;  %v2754_v43 = vadd.f32 %v2753_v41, %v2752_v57  ;;  %v2580_v57 = vld [vmem:[%s4595_s11] sm:$0x1]  ;;  %s2817_s11 = sshll.u32 %s3914_s10, 4  ;;  %s2818_s11 = int_to_ptr.vmem [resolvable:$true] %s2817_s11 }
 0x421   :  { %3633 = vmatprep.mubr.bf16.mxu1 %v2464_v25  ;;  %s3879_s13 = scalar_lea.vmem %s2818_s11, 512  ;;  %p3884_p7 = scmp.lt.s32.totalorder %s2818_s11, %s2818_s11 }
 0x422   :  { %3634 = vmatmul.mubr.bf16.vlgmr.msra.gmra.mxu1 %v2465_v26  ;;  %v2766_v44 = vrot.slane %v2765_v42, 2  ;;  %v2755_v1 = vrot.slane %v2754_v43, 1  ;;  %p3880_p6 = scmp.ne.s32.totalorder %s2818_s11, %s3879_s13  ;;  %p3885_p8 = scmp.lt.s32.totalorder %s3879_s13, %s3879_s13 }
 0x424   :  { %v2767_v45 = vadd.f32 %v2766_v44, %v2765_v42  ;;  %v2756_v46 = vadd.f32 %v2755_v1, %v2754_v43  ;;  %p3886_p9 = por %p3885_p8, %p3884_p7 }
 0x426   :  { %v2768_v47 = vrot.slane %v2767_v45, 1  ;;  %v2770_v52 = vmul.f32 0.03125, %v2756_v46  ;;  %p3887_p10 = pnand %p3886_p9, %p3880_p6 }
 0x428   :  { %v2769_v51 = vadd.f32 %v2768_v47, %v2767_v45  ;;  %v2772_v62 = vmul.f32 %v2770_v52, %v2770_v52 }
 0x42a   :  { %v2771_v61 = vmul.f32 0.03125, %v2769_v51 }
 0x42c   :  { %v2773_v7 = vsub.f32 %v2771_v61, %v2772_v62 }
 0x42e   :  { %v2774_v16 = vmax.f32 %v2773_v7, 0.0 }
 0x430   :  { %v2775_v21 = vadd.f32 1e-05, %v2774_v16 }
 0x432   :  { %3787 = vrsqrt.f32 %v2775_v21 }
 0x43f   :  { %v3788_v30 = vpop.eup %3787 }
 0x440   :  { %v2777_v32 = vmul.f32 %v3788_v30, %v2746_v31 }
 0x442   :  { %v2778_v33 = vmul.f32 %v2777_v32, %v2770_v52  ;;  %v2784_v36 = vrot.slane %v2777_v32, %v4257_v49 }
 0x444   :  { %v2779_v38 = vsub.f32 %v2747_v34, %v2778_v33  ;;  %v2786_v40 = vmul.f32 %v2784_v36, %v4543_v27  ;;  %v2787_v43 = vmul.f32 %v2784_v36, %v4547_v53  ;;  %v2788_v44 = vmul.f32 %v4541_v12, %v2784_v36 }
 0x445   :  { %v2789_v1 = vmul.f32 %v4545_v28, %v2784_v36 }
 0x446   :  { %v2794_v45 = vrot.slane %v2779_v38, %v4257_v49 }
 0x448   :  { %v2797_v27 = vadd.f32 %v2794_v45, %v2787_v43  ;;  %v2798_v61 = vadd.f32 %v2794_v45, %v2788_v44  ;;  %v2799_v62 = vadd.f32 %v2794_v45, %v2789_v1 }
 0x4e2   :  { %v3635_v48 = vpop.f32.mrf.mxu1 }
 0x4e3   :  { %v2592_v63 = vmul.f32 %v3635_v48, %v3635_v48 }
 0x4e4   :  { %v2564_v50 = vpop.f32.mrf.mxu1 }
 0x4e5   :  { %v2590_v56 = vmul.f32 %v2564_v50, %v2564_v50 }
 0x4e6   :  { %v3636_v54 = vpop.f32.mrf.mxu1 }
 0x4e7   :  { %v2593_v4 = vmul.f32 %v3636_v54, %v3636_v54 }
 0x4e8   :  { %v2567_v55 = vpop.f32.mrf.mxu1 }
 0x4e9   :  { %v2581_v59 = vadd.f32 %v2567_v55, %v2564_v50  ;;  %v2591_v60 = vmul.f32 %v2567_v55, %v2567_v55 }
 0x4eb   :  { %v2582_v0 = vadd.f32 %v3635_v48, %v2581_v59  ;;  %v2594_v3 = vadd.f32 %v2591_v60, %v2590_v56  ;;  %v2796_v60 = vadd.f32 %v2794_v45, %v2786_v40 }
 0x4ed   :  { %v2583_v5 = vadd.f32 %v3636_v54, %v2582_v0  ;;  %v2595_v6 = vadd.f32 %v2594_v3, %v2592_v63 }
 0x4ef   :  { %v2584_v8 = vrot.slane %v2583_v5, 4  ;;  %v2596_v9 = vadd.f32 %v2595_v6, %v2593_v4 }
 0x4f1   :  { %v2585_v13 = vadd.f32 %v2584_v8, %v2583_v5  ;;  %v2597_v15 = vrot.slane %v2596_v9, 4 }
 0x4f3   :  { %v2586_v17 = vrot.slane %v2585_v13, 2  ;;  %v2598_v18 = vadd.f32 %v2597_v15, %v2596_v9 }
 0x4f5   :  { %v2587_v19 = vadd.f32 %v2586_v17, %v2585_v13  ;;  %v2599_v20 = vrot.slane %v2598_v18, 2 }
 0x4f7   :  { %v2588_v22 = vrot.slane %v2587_v19, 1  ;;  %v2600_v58 = vadd.f32 %v2599_v20, %v2598_v18 }
 0x4f9   :  { %v2589_v11 = vadd.f32 %v2588_v22, %v2587_v19  ;;  %v2601_v23 = vrot.slane %v2600_v58, 1 }
 0x4fb   :  { %v2602_v10 = vadd.f32 %v2601_v23, %v2600_v58  ;;  %v2603_v24 = vmul.f32 0.03125, %v2589_v11 }
 0x4fd   :  { %v2604_v14 = vmul.f32 0.03125, %v2602_v10  ;;  %v2605_v2 = vmul.f32 %v2603_v24, %v2603_v24 }
 0x4ff   :  { %v2606_v25 = vsub.f32 %v2604_v14, %v2605_v2 }
 0x501   :  { %v2607_v26 = vmax.f32 %v2606_v25, 0.0 }
 0x503   :  { %v2608_v29 = vadd.f32 1e-05, %v2607_v26 }
 0x505   :  { %3789 = vrsqrt.f32 %v2608_v29 }
 0x512   :  { %v3790_v37 = vpop.eup %3789 }
 0x513   :  { %v2610_v39 = vmul.f32 %v3790_v37, %v2579_v35 }
 0x515   :  { %v2611_v41 = vmul.f32 %v2610_v39, %v2603_v24  ;;  %v2617_v42 = vrot.slane %v2610_v39, %v4257_v49 }
 0x517   :  { %v2612_v46 = vsub.f32 %v2580_v57, %v2611_v41  ;;  %v2619_v47 = vmul.f32 %v2617_v42, %v2564_v50  ;;  %v2620_v51 = vmul.f32 %v2617_v42, %v2567_v55  ;;  %v2621_v52 = vmul.f32 %v3635_v48, %v2617_v42 }
 0x518   :  { %v2622_v56 = vmul.f32 %v3636_v54, %v2617_v42 }
 0x519   :  { %v2627_v59 = vrot.slane %v2612_v46, %v4257_v49 }
 0x51b   :  { %v2629_v63 = vadd.f32 %v2627_v59, %v2619_v47  ;;  %v2630_v0 = vadd.f32 %v2627_v59, %v2620_v51  ;;  %v2631_v53 = vadd.f32 %v2627_v59, %v2621_v52  ;;  %v2632_v3 = vadd.f32 %v2627_v59, %v2622_v56 }
 0x51d   :  { %v2801_v12 = vadd.f32 %v2797_v27, %v2630_v0  ;;  %v2800_v28 = vadd.f32 %v2796_v60, %v2629_v63  ;;  %v2802_v4 = vadd.f32 %v2798_v61, %v2631_v53  ;;  %v2803_v5 = vadd.f32 %v2799_v62, %v2632_v3 }
 0x51f   :  { %v2805_v50 = vmax.f32 %v2801_v12, 0.0  ;;  %v2804_v55 = vmax.f32 %v2800_v28, 0.0  ;;  %v2806_v48 = vmax.f32 %v2802_v4, 0.0  ;;  %v2807_v54 = vmax.f32 %v2803_v5, 0.0 }
 0x521   :  { %2809 = vst [vmem:[#allocation10 + $0x8] sm:$0xff] %v2805_v50  ;;  %2808 = vst [vmem:[#allocation10] sm:$0xff] %v2804_v55 }
 0x522   :  { %2810 = vst [vmem:[#allocation10 + $0x10] sm:$0xff] %v2806_v48  ;;  %2811 = vst [vmem:[#allocation10 + $0x18] sm:$0xff] %v2807_v54 }
 0x523   :  { %3890 = shalt.err (!%p3887_p10)
}
 0x524   :  { %s3915_s14 = smov 128   ;;  %s3916_s16 = smov 8  }
 0x525   :  { %2823 = dma.vmem_to_hbm [thread:$0]  %s2818_s11, 512, %s4599_s15, [#allocation4], %s3915_s14, %s3915_s14, %s3916_s16  }
 0x526   :  { %3905 = dma.done.wait [#allocation4], 512  }
 0x527   :  { %3906 = vsyncadd [#allocation4], 4294966784 }
 0x528   :  { %2827 = vsyncpa [#allocation3], 1 }
 0x529   :  { %2828 = vsyncpa [#allocation6], 1 }
 0x52a   :  { %2829 = vsyncpa [#allocation9], 1 }
 0x52b   :  { %2830 = vsyncpa [#allocation4], 1 }

</bundles_post_ra>
